<compile_context>
chip_gen: v5e
topology: v5e:2x2
jax: 0.10.0
libtpu: 0.0.40
codegen_flags: <defaults>
</compile_context>

<pallas_src>
import functools
import math

import jax
import jax.numpy as jnp
import numpy as np
from jax.experimental import pallas as pl
from jax.experimental.pallas import tpu as pltpu

LN_EPS = 1e-5     # PyTorch nn.LayerNorm default
OUT_PAD = 128     # lane-dense width for the 2-logit output block


def _round_up(x, m):
    return ((x + m - 1) // m) * m


def _layernorm(x, w, b):
    mu = jnp.mean(x, axis=-1, keepdims=True)
    var = jnp.mean((x - mu) ** 2, axis=-1, keepdims=True)
    return (x - mu) * jax.lax.rsqrt(var + LN_EPS) * w + b


def _gelu_exact(x):
    # nn.GELU default (erf form)
    return 0.5 * x * (1.0 + jax.lax.erf(x / math.sqrt(2.0)))


# packed (1, D) rows (zero padded on the right where narrower than D)
(_R_Q0, _R_N1W, _R_N1B, _R_BO, _R_N2W, _R_N2B, _R_FC2B, _R_PB1, _R_PB2, _NUM_ROWS) = range(10)


def _grasp_kernel(x_ref, rows_ref, fc1b_ref, pmat_ref, wbig_ref, fc2w_ref, pw2_ref, out_ref,
                  *, num_heads, dvs, mlp_hidden, d4p):
    f32 = jnp.float32
    Bt, N, D = x_ref.shape
    H = num_heads
    wdt = wbig_ref.dtype
    outp = out_ref.shape[1]

    x = x_ref[...].astype(f32).reshape(Bt * N, D)          # stream native dtype, math in f32

    rows = rows_ref[...]
    q0   = rows[_R_Q0:_R_Q0 + 1, :]
    n1w  = rows[_R_N1W:_R_N1W + 1, :]
    n1b  = rows[_R_N1B:_R_N1B + 1, :]
    bo   = rows[_R_BO:_R_BO + 1, :]                        # bv @ wo + bo (host fold)
    n2w  = rows[_R_N2W:_R_N2W + 1, :]
    n2b  = rows[_R_N2B:_R_N2B + 1, :]
    fc2b = rows[_R_FC2B:_R_FC2B + 1, :]
    pb1  = rows[_R_PB1:_R_PB1 + 1, :d4p]
    pb2  = rows[_R_PB2:_R_PB2 + 1, :outp]

    # LayerNorm1 + fused [V | per-head score] projection over all Bt*N tokens (one MXU pass)
    xn = _layernorm(x, n1w, n1b).astype(wdt)
    vs = jnp.dot(xn, wbig_ref[:, :dvs], preferred_element_type=f32)        # (Bt*N, dvs)
    v = vs[:, :D]                                                          # bias folded into bo
    s = vs[:, D:D + H]                                                     # key bias/scale folded out

    # softmax over tokens, per (batch, head)
    s = s.reshape(Bt, N, H)
    s = s - jnp.max(s, axis=1, keepdims=True)
    p = jnp.exp(s)
    p = p / jnp.sum(p, axis=1, keepdims=True)

    # expand per-head probs across head_dim lanes (MXU) and reduce over tokens
    pe = jax.lax.dot_general(p.reshape(Bt * N, H).astype(wdt), pmat_ref[...],
                             (((1,), (1,)), ((), ())), preferred_element_type=f32)  # (Bt*N, D)
    attn = jnp.sum((pe * v).reshape(Bt, N, D), axis=1)                     # (Bt, D)

    # output projection + residual
    off = dvs
    y = jnp.dot(attn.astype(wdt), wbig_ref[:, off:off + D], preferred_element_type=f32) + bo
    q1 = q0 + y                                                            # query is NOT normed
    off += D

    # MLP block + residual
    q1n = _layernorm(q1, n2w, n2b).astype(wdt)
    hmid = _gelu_exact(jnp.dot(q1n, wbig_ref[:, off:off + mlp_hidden],
                               preferred_element_type=f32) + fc1b_ref[...])
    off += mlp_hidden
    mlp = jnp.dot(hmid.astype(wdt), fc2w_ref[...], preferred_element_type=f32) + fc2b
    q2 = q1 + mlp                                                          # (Bt, D) pooled token

    # probe: Linear(D, D//4) -> ReLU -> Linear(D//4, 2), lane-padded to stay dense
    p1 = jnp.maximum(jnp.dot(q2.astype(wdt), wbig_ref[:, off:off + d4p],
                             preferred_element_type=f32) + pb1, 0.0)
    out_ref[...] = jnp.dot(p1.astype(wdt), pw2_ref[...], preferred_element_type=f32) + pb2


def grasp_linear_probe(x, params, *, num_heads, batch_block=32, weight_dtype=jnp.float32):
    B, N, D = x.shape
    assert D % num_heads == 0 and D % 128 == 0, "weight packing assumes a 128-multiple embed dim"
    head_dim = D // num_heads
    d4 = params["pw1"].shape[1]
    d4p = _round_up(d4, 128)
    mlp_hidden = params["fc1_w"].shape[1]
    dvs = _round_up(D + num_heads, 128)
    assert d4p <= D and OUT_PAD <= D, "row packing assumes D >= 128"
    f32 = jnp.float32
    wdt = weight_dtype

    # ---- host-side, batch-invariant folds ----------------------------------------------------
    q0 = params["query_tokens"].astype(f32).reshape(1, D)
    qs = (q0 @ params["wq"].astype(f32) + params["bq"].astype(f32).reshape(1, D)) / math.sqrt(head_dim)
    pmat = jnp.repeat(jnp.eye(num_heads, dtype=f32), head_dim, axis=0)     # (D, H) head-pool matrix
    w_s = (params["wk"].astype(f32) * qs) @ pmat                           # folded K/score proj (D, H)
    bo_f = (params["bv"].astype(f32).reshape(1, D) @ params["wo"].astype(f32)
            + params["bo"].astype(f32).reshape(1, D))                      # V bias -> out-proj bias
    # (key bias + score scale are softmax-invariant / already inside w_s)

    def row(p, width=D):
        p = p.astype(f32).reshape(1, -1)
        return jnp.pad(p, ((0, 0), (0, width - p.shape[1])))

    rows = jnp.concatenate([
        q0,
        row(params["norm1_w"]), row(params["norm1_b"]),
        bo_f,
        row(params["norm2_w"]), row(params["norm2_b"]),
        row(params["fc2_b"]),
        row(params["pb1"]), row(params["pb2"]),
    ], axis=0)                                                             # (_NUM_ROWS - 1... 9, D)

    fc1_b = params["fc1_b"].astype(f32).reshape(1, -1)

    # packed D-row weight matrix: [ wv | w_s(pad) | wo | fc1_w | pw1(pad) ] -- one input / one DMA
    wvs = jnp.pad(jnp.concatenate([params["wv"].astype(f32), w_s], axis=1),
                  ((0, 0), (0, dvs - (D + num_heads))))
    pw1p = jnp.pad(params["pw1"].astype(f32), ((0, 0), (0, d4p - d4)))
    wbig = jnp.concatenate(
        [wvs, params["wo"].astype(f32), params["fc1_w"].astype(f32), pw1p], axis=1).astype(wdt)
    fc2w = params["fc2_w"].astype(wdt)
    pw2p = jnp.pad(params["pw2"].astype(f32),
                   ((0, d4p - d4), (0, OUT_PAD - params["pw2"].shape[1]))).astype(wdt)
    pmat_w = pmat.astype(wdt)

    # ---- batch blocking (large Bt; even step count so v7x's 2 TCs both get work) --------------
    Bt = max(8, (batch_block // 8) * 8)
    if B <= Bt:
        Bt = max(8, _round_up(B, 8))                  # single step, minimal padding
    else:
        steps = pl.cdiv(B, Bt)
        if steps % 2:
            steps += 1                                # even "parallel" steps for the 2 TCs on v7x
        Bt = max(8, _round_up(pl.cdiv(B, steps), 8))
    Bp = pl.cdiv(B, Bt) * Bt
    xp = x if Bp == B else jnp.pad(x, ((0, Bp - B), (0, 0), (0, 0)))       # keep native dtype

    param_list = [rows, fc1_b, pmat_w, wbig, fc2w, pw2p]
    in_specs = [pl.BlockSpec((Bt, N, D), lambda b: (b, 0, 0))]             # per-step batch block
    in_specs += [pl.BlockSpec(p.shape, lambda b: (0, 0)) for p in param_list]  # resident weights
    # TODO(synk): at real ViT widths (D>=768, mlp=4D) single-buffer the grid-invariant weight
    # blocks (pipeline_mode=pl.Buffered(1)) so the resident set stays inside v7x's 64 MiB VMEM.

    out = pl.pallas_call(
        functools.partial(_grasp_kernel, num_heads=num_heads, dvs=dvs,
                          mlp_hidden=mlp_hidden, d4p=d4p),
        out_shape=jax.ShapeDtypeStruct((Bp, OUT_PAD), f32),
        grid_spec=pltpu.PrefetchScalarGridSpec(
            num_scalar_prefetch=0,
            grid=(Bp // Bt,),
            in_specs=in_specs,
            out_specs=pl.BlockSpec((Bt, OUT_PAD), lambda b: (b, 0)),
        ),
        compiler_params=pltpu.CompilerParams(
            dimension_semantics=("parallel",),
            vmem_limit_bytes=48 * 1024 * 1024,
        ),
    )(xp, *param_list)
    return out[:B, :2]                                                     # (B, 2)


def ref_forward(x, p, num_heads):
    """Pure-JAX reference with identical semantics (for verification)."""
    B, N, D = x.shape
    hd = D // num_heads
    xn = _layernorm(x, p["norm1_w"], p["norm1_b"])
    q0 = jnp.broadcast_to(p["query_tokens"], (B, 1, D))
    qp = q0 @ p["wq"] + p["bq"]
    k = xn @ p["wk"] + p["bk"]
    v = xn @ p["wv"] + p["bv"]
    qh = qp.reshape(B, 1, num_heads, hd).transpose(0, 2, 1, 3)
    kh = k.reshape(B, N, num_heads, hd).transpose(0, 2, 1, 3)
    vh = v.reshape(B, N, num_heads, hd).transpose(0, 2, 1, 3)
    s = (qh @ kh.transpose(0, 1, 3, 2)) / math.sqrt(hd)
    attn = jax.nn.softmax(s, axis=-1)
    o = (attn @ vh).transpose(0, 2, 1, 3).reshape(B, 1, D)
    y = o @ p["wo"] + p["bo"]
    q1 = q0 + y
    q1n = _layernorm(q1, p["norm2_w"], p["norm2_b"])
    mlp = _gelu_exact(q1n @ p["fc1_w"] + p["fc1_b"]) @ p["fc2_w"] + p["fc2_b"]
    q2 = (q1 + mlp)[:, 0, :]
    h = jnp.maximum(q2 @ p["pw1"] + p["pb1"], 0.0)
    return h @ p["pw2"] + p["pb2"]


if __name__ == "__main__":
    # Small config consistent with the module (a down-scaled "vit" embed dim).
    B, N, D = 2, 16, 128
    num_heads = 4
    mlp_hidden = int(D * 4.0)
    d4 = D // 4
    std = 0.02

    key = jax.random.PRNGKey(0)
    ks = jax.random.split(key, 20)

    def w(k, shape):
        return (std * jax.random.normal(k, shape)).astype(jnp.float32)

    params = {
        "query_tokens": w(ks[0], (1, D)),
        "norm1_w": jnp.ones((1, D), jnp.float32),
        "norm1_b": jnp.zeros((1, D), jnp.float32),
        "wq": w(ks[1], (D, D)),            "bq": w(ks[2], (1, D)),
        "wk": w(ks[3], (D, D)),            "bk": w(ks[4], (1, D)),
        "wv": w(ks[5], (D, D)),            "bv": w(ks[6], (1, D)),
        "wo": w(ks[7], (D, D)),            "bo": w(ks[8], (1, D)),
        "norm2_w": jnp.ones((1, D), jnp.float32),
        "norm2_b": jnp.zeros((1, D), jnp.float32),
        "fc1_w": w(ks[9], (D, mlp_hidden)),  "fc1_b": w(ks[10], (1, mlp_hidden)),
        "fc2_w": w(ks[11], (mlp_hidden, D)), "fc2_b": w(ks[12], (1, D)),
        "pw1": w(ks[13], (D, d4)),           "pb1": w(ks[14], (1, d4)),
        "pw2": w(ks[15], (d4, 2)),           "pb2": w(ks[16], (1, 2)),
    }

    # single-step grid (B padded up to one batch block), f32 weights, tight tolerance
    x = jax.random.normal(ks[17], (B, N, D), dtype=jnp.float32)
    out = jax.block_until_ready(grasp_linear_probe(x, params, num_heads=num_heads))
    assert out.shape == (B, 2)
    ref = ref_forward(x, params, num_heads=num_heads)
    np.testing.assert_allclose(np.asarray(out), np.asarray(ref), atol=3e-4, rtol=3e-4)

    # multi-step grid with padding and an even step count (B=80 -> 4 blocks of 24)
    B2 = 80
    x2 = jax.random.normal(ks[18], (B2, N, D), dtype=jnp.float32)
    out2 = jax.block_until_ready(grasp_linear_probe(x2, params, num_heads=num_heads))
    ref2 = ref_forward(x2, params, num_heads=num_heads)
    np.testing.assert_allclose(np.asarray(out2), np.asarray(ref2), atol=3e-4, rtol=3e-4)

    # bf16 streamed activations + bf16 weights with f32 accumulation (looser tolerance)
    x3 = x2.astype(jnp.bfloat16)
    out3 = jax.block_until_ready(
        grasp_linear_probe(x3, params, num_heads=num_heads, weight_dtype=jnp.bfloat16))
    ref3 = ref_forward(x3.astype(jnp.float32), params, num_heads=num_heads)
    np.testing.assert_allclose(np.asarray(out3), np.asarray(ref3), atol=5e-3, rtol=5e-2)

    print("KERNEL_OK")
</pallas_src>

<mosaic_0001>
module attributes {stable_mosaic.version = 11 : i64} {
  func.func @_grasp_kernel(%arg0: i32, %arg1: memref<8x16x128xf32, #tpu.memory_space<vmem>>, %arg2: memref<9x128xf32, #tpu.memory_space<vmem>>, %arg3: memref<1x512xf32, #tpu.memory_space<vmem>>, %arg4: memref<128x4xf32, #tpu.memory_space<vmem>>, %arg5: memref<128x1024xf32, #tpu.memory_space<vmem>>, %arg6: memref<512x128xf32, #tpu.memory_space<vmem>>, %arg7: memref<128x128xf32, #tpu.memory_space<vmem>>, %arg8: memref<8x128xf32, #tpu.memory_space<vmem>>) attributes {dimension_semantics = [#tpu.dimension_semantics<parallel>], iteration_bounds = array<i64: 1>, scalar_prefetch = 0 : i64, scratch_operands = 0 : i64, tpu.core_type = #tpu.core_type<tc>, window_params = [{transform_indices = @transform_0, window_bounds = array<i64: 8, 16, 128>}, {pipeline_mode = #tpu.pipeline_mode<synchronous>, transform_indices = @transform_1, window_bounds = array<i64: 9, 128>}, {pipeline_mode = #tpu.pipeline_mode<synchronous>, transform_indices = @transform_2, window_bounds = array<i64: 1, 512>}, {pipeline_mode = #tpu.pipeline_mode<synchronous>, transform_indices = @transform_3, window_bounds = array<i64: 128, 4>}, {pipeline_mode = #tpu.pipeline_mode<synchronous>, transform_indices = @transform_4, window_bounds = array<i64: 128, 1024>}, {pipeline_mode = #tpu.pipeline_mode<synchronous>, transform_indices = @transform_5, window_bounds = array<i64: 512, 128>}, {pipeline_mode = #tpu.pipeline_mode<synchronous>, transform_indices = @transform_6, window_bounds = array<i64: 128, 128>}, {transform_indices = @transform_7, window_bounds = array<i64: 8, 128>}]} {
    %c0 = arith.constant 0 : index
    %c0_0 = arith.constant 0 : index
    %c0_1 = arith.constant 0 : index
    %0 = vector.load %arg1[%c0, %c0_0, %c0_1] : memref<8x16x128xf32, #tpu.memory_space<vmem>>, vector<8x16x128xf32>
    %1 = vector.shape_cast %0 : vector<8x16x128xf32> to vector<128x128xf32>
    %c0_2 = arith.constant 0 : index
    %c0_3 = arith.constant 0 : index
    %2 = vector.load %arg2[%c0_2, %c0_3] : memref<9x128xf32, #tpu.memory_space<vmem>>, vector<9x128xf32>
    %3 = vector.extract_strided_slice %2 {offsets = [0, 0], sizes = [1, 128], strides = [1, 1]} : vector<9x128xf32> to vector<1x128xf32>
    %4 = vector.extract_strided_slice %2 {offsets = [1, 0], sizes = [1, 128], strides = [1, 1]} : vector<9x128xf32> to vector<1x128xf32>
    %5 = vector.extract_strided_slice %2 {offsets = [2, 0], sizes = [1, 128], strides = [1, 1]} : vector<9x128xf32> to vector<1x128xf32>
    %6 = vector.extract_strided_slice %2 {offsets = [3, 0], sizes = [1, 128], strides = [1, 1]} : vector<9x128xf32> to vector<1x128xf32>
    %7 = vector.extract_strided_slice %2 {offsets = [4, 0], sizes = [1, 128], strides = [1, 1]} : vector<9x128xf32> to vector<1x128xf32>
    %8 = vector.extract_strided_slice %2 {offsets = [5, 0], sizes = [1, 128], strides = [1, 1]} : vector<9x128xf32> to vector<1x128xf32>
    %9 = vector.extract_strided_slice %2 {offsets = [6, 0], sizes = [1, 128], strides = [1, 1]} : vector<9x128xf32> to vector<1x128xf32>
    %10 = vector.extract_strided_slice %2 {offsets = [7, 0], sizes = [1, 128], strides = [1, 1]} : vector<9x128xf32> to vector<1x128xf32>
    %11 = vector.extract_strided_slice %2 {offsets = [8, 0], sizes = [1, 128], strides = [1, 1]} : vector<9x128xf32> to vector<1x128xf32>
    %cst = arith.constant dense<0.000000e+00> : vector<128xf32>
    %12 = vector.multi_reduction <add>, %1, %cst [1] : vector<128x128xf32> to vector<128xf32>
    %13 = vector.shape_cast %12 : vector<128xf32> to vector<128x1xf32>
    %cst_4 = arith.constant 1.280000e+02 : f32
    %14 = vector.broadcast %cst_4 : f32 to vector<128x1xf32>
    %15 = arith.divf %13, %14 : vector<128x1xf32>
    %16 = vector.broadcast %15 : vector<128x1xf32> to vector<128x128xf32>
    %17 = arith.subf %1, %16 : vector<128x128xf32>
    %18 = arith.mulf %17, %17 : vector<128x128xf32>
    %cst_5 = arith.constant dense<0.000000e+00> : vector<128xf32>
    %19 = vector.multi_reduction <add>, %18, %cst_5 [1] : vector<128x128xf32> to vector<128xf32>
    %20 = vector.shape_cast %19 : vector<128xf32> to vector<128x1xf32>
    %cst_6 = arith.constant 1.280000e+02 : f32
    %21 = vector.broadcast %cst_6 : f32 to vector<128x1xf32>
    %22 = arith.divf %20, %21 : vector<128x1xf32>
    %23 = vector.broadcast %15 : vector<128x1xf32> to vector<128x128xf32>
    %24 = arith.subf %1, %23 : vector<128x128xf32>
    %cst_7 = arith.constant 9.99999974E-6 : f32
    %25 = vector.broadcast %cst_7 : f32 to vector<128x1xf32>
    %26 = arith.addf %22, %25 : vector<128x1xf32>
    %27 = math.rsqrt %26 : vector<128x1xf32>
    %28 = vector.broadcast %27 : vector<128x1xf32> to vector<128x128xf32>
    %29 = arith.mulf %24, %28 : vector<128x128xf32>
    %30 = vector.broadcast %4 : vector<1x128xf32> to vector<128x128xf32>
    %31 = arith.mulf %29, %30 : vector<128x128xf32>
    %32 = vector.broadcast %5 : vector<1x128xf32> to vector<128x128xf32>
    %33 = arith.addf %31, %32 : vector<128x128xf32>
    %c0_8 = arith.constant 0 : index
    %c0_9 = arith.constant 0 : index
    %34 = vector.load %arg5[%c0_8, %c0_9] : memref<128x1024xf32, #tpu.memory_space<vmem>>, vector<128x256xf32>
    %cst_10 = arith.constant dense<0.000000e+00> : vector<128x256xf32>
    %35 = tpu.matmul %33, %34, %cst_10 {dimension_numbers = #tpu.dot_dimension_numbers<[1], [0], [0], [1], [0, 0, 1, 1], [], []>} : vector<128x128xf32>, vector<128x256xf32>, vector<128x256xf32> -> vector<128x256xf32>
    %36 = vector.extract_strided_slice %35 {offsets = [0, 0], sizes = [128, 128], strides = [1, 1]} : vector<128x256xf32> to vector<128x128xf32>
    %37 = vector.extract_strided_slice %35 {offsets = [0, 128], sizes = [128, 4], strides = [1, 1]} : vector<128x256xf32> to vector<128x4xf32>
    %38 = vector.shape_cast %37 : vector<128x4xf32> to vector<8x16x4xf32>
    %cst_11 = arith.constant dense<0xFF800000> : vector<8x4xf32>
    %39 = vector.multi_reduction <maximumf>, %38, %cst_11 [1] : vector<8x16x4xf32> to vector<8x4xf32>
    %40 = vector.shape_cast %39 : vector<8x4xf32> to vector<8x1x4xf32>
    %41 = vector.broadcast %40 : vector<8x1x4xf32> to vector<8x16x4xf32>
    %42 = arith.subf %38, %41 : vector<8x16x4xf32>
    %43 = math.exp %42 : vector<8x16x4xf32>
    %cst_12 = arith.constant dense<0.000000e+00> : vector<8x4xf32>
    %44 = vector.multi_reduction <add>, %43, %cst_12 [1] : vector<8x16x4xf32> to vector<8x4xf32>
    %45 = vector.shape_cast %44 : vector<8x4xf32> to vector<8x1x4xf32>
    %46 = vector.broadcast %45 : vector<8x1x4xf32> to vector<8x16x4xf32>
    %47 = arith.divf %43, %46 : vector<8x16x4xf32>
    %48 = vector.shape_cast %47 : vector<8x16x4xf32> to vector<128x4xf32>
    %c0_13 = arith.constant 0 : index
    %c0_14 = arith.constant 0 : index
    %49 = vector.load %arg4[%c0_13, %c0_14] : memref<128x4xf32, #tpu.memory_space<vmem>>, vector<128x4xf32>
    %cst_15 = arith.constant dense<0.000000e+00> : vector<128x128xf32>
    %50 = tpu.matmul %48, %49, %cst_15 {dimension_numbers = #tpu.dot_dimension_numbers<[1], [1], [0], [0], [0, 0, 1, 0], [], []>} : vector<128x4xf32>, vector<128x4xf32>, vector<128x128xf32> -> vector<128x128xf32>
    %51 = arith.mulf %50, %36 : vector<128x128xf32>
    %52 = vector.shape_cast %51 : vector<128x128xf32> to vector<8x16x128xf32>
    %cst_16 = arith.constant dense<0.000000e+00> : vector<8x128xf32>
    %53 = vector.multi_reduction <add>, %52, %cst_16 [1] : vector<8x16x128xf32> to vector<8x128xf32>
    %c0_17 = arith.constant 0 : index
    %c256 = arith.constant 256 : index
    %54 = vector.load %arg5[%c0_17, %c256] : memref<128x1024xf32, #tpu.memory_space<vmem>>, vector<128x128xf32>
    %cst_18 = arith.constant dense<0.000000e+00> : vector<8x128xf32>
    %55 = tpu.matmul %53, %54, %cst_18 {dimension_numbers = #tpu.dot_dimension_numbers<[1], [0], [0], [1], [0, 0, 1, 1], [], []>} : vector<8x128xf32>, vector<128x128xf32>, vector<8x128xf32> -> vector<8x128xf32>
    %56 = vector.broadcast %6 : vector<1x128xf32> to vector<8x128xf32>
    %57 = arith.addf %55, %56 : vector<8x128xf32>
    %58 = vector.broadcast %3 : vector<1x128xf32> to vector<8x128xf32>
    %59 = arith.addf %58, %57 : vector<8x128xf32>
    %cst_19 = arith.constant dense<0.000000e+00> : vector<8xf32>
    %60 = vector.multi_reduction <add>, %59, %cst_19 [1] : vector<8x128xf32> to vector<8xf32>
    %61 = vector.shape_cast %60 : vector<8xf32> to vector<8x1xf32>
    %cst_20 = arith.constant 1.280000e+02 : f32
    %62 = vector.broadcast %cst_20 : f32 to vector<8x1xf32>
    %63 = arith.divf %61, %62 : vector<8x1xf32>
    %64 = vector.broadcast %63 : vector<8x1xf32> to vector<8x128xf32>
    %65 = arith.subf %59, %64 : vector<8x128xf32>
    %66 = arith.mulf %65, %65 : vector<8x128xf32>
    %cst_21 = arith.constant dense<0.000000e+00> : vector<8xf32>
    %67 = vector.multi_reduction <add>, %66, %cst_21 [1] : vector<8x128xf32> to vector<8xf32>
    %68 = vector.shape_cast %67 : vector<8xf32> to vector<8x1xf32>
    %cst_22 = arith.constant 1.280000e+02 : f32
    %69 = vector.broadcast %cst_22 : f32 to vector<8x1xf32>
    %70 = arith.divf %68, %69 : vector<8x1xf32>
    %71 = vector.broadcast %63 : vector<8x1xf32> to vector<8x128xf32>
    %72 = arith.subf %59, %71 : vector<8x128xf32>
    %cst_23 = arith.constant 9.99999974E-6 : f32
    %73 = vector.broadcast %cst_23 : f32 to vector<8x1xf32>
    %74 = arith.addf %70, %73 : vector<8x1xf32>
    %75 = math.rsqrt %74 : vector<8x1xf32>
    %76 = vector.broadcast %75 : vector<8x1xf32> to vector<8x128xf32>
    %77 = arith.mulf %72, %76 : vector<8x128xf32>
    %78 = vector.broadcast %7 : vector<1x128xf32> to vector<8x128xf32>
    %79 = arith.mulf %77, %78 : vector<8x128xf32>
    %80 = vector.broadcast %8 : vector<1x128xf32> to vector<8x128xf32>
    %81 = arith.addf %79, %80 : vector<8x128xf32>
    %c0_24 = arith.constant 0 : index
    %c384 = arith.constant 384 : index
    %82 = vector.load %arg5[%c0_24, %c384] : memref<128x1024xf32, #tpu.memory_space<vmem>>, vector<128x512xf32>
    %cst_25 = arith.constant dense<0.000000e+00> : vector<8x512xf32>
    %83 = tpu.matmul %81, %82, %cst_25 {dimension_numbers = #tpu.dot_dimension_numbers<[1], [0], [0], [1], [0, 0, 1, 1], [], []>} : vector<8x128xf32>, vector<128x512xf32>, vector<8x512xf32> -> vector<8x512xf32>
    %c0_26 = arith.constant 0 : index
    %c0_27 = arith.constant 0 : index
    %84 = vector.load %arg3[%c0_26, %c0_27] : memref<1x512xf32, #tpu.memory_space<vmem>>, vector<1x512xf32>
    %85 = vector.broadcast %84 : vector<1x512xf32> to vector<8x512xf32>
    %86 = arith.addf %83, %85 : vector<8x512xf32>
    %cst_28 = arith.constant 5.000000e-01 : f32
    %87 = vector.broadcast %cst_28 : f32 to vector<8x512xf32>
    %88 = arith.mulf %87, %86 : vector<8x512xf32>
    %cst_29 = arith.constant 1.41421354 : f32
    %89 = vector.broadcast %cst_29 : f32 to vector<8x512xf32>
    %90 = arith.divf %86, %89 : vector<8x512xf32>
    %91 = math.erf %90 : vector<8x512xf32>
    %cst_30 = arith.constant 1.000000e+00 : f32
    %92 = vector.broadcast %cst_30 : f32 to vector<8x512xf32>
    %93 = arith.addf %92, %91 : vector<8x512xf32>
    %94 = arith.mulf %88, %93 : vector<8x512xf32>
    %c0_31 = arith.constant 0 : index
    %c0_32 = arith.constant 0 : index
    %95 = vector.load %arg6[%c0_31, %c0_32] : memref<512x128xf32, #tpu.memory_space<vmem>>, vector<512x128xf32>
    %cst_33 = arith.constant dense<0.000000e+00> : vector<8x128xf32>
    %96 = tpu.matmul %94, %95, %cst_33 {dimension_numbers = #tpu.dot_dimension_numbers<[1], [0], [0], [1], [0, 0, 1, 1], [], []>} : vector<8x512xf32>, vector<512x128xf32>, vector<8x128xf32> -> vector<8x128xf32>
    %97 = vector.broadcast %9 : vector<1x128xf32> to vector<8x128xf32>
    %98 = arith.addf %96, %97 : vector<8x128xf32>
    %99 = arith.addf %59, %98 : vector<8x128xf32>
    %c0_34 = arith.constant 0 : index
    %c896 = arith.constant 896 : index
    %100 = vector.load %arg5[%c0_34, %c896] : memref<128x1024xf32, #tpu.memory_space<vmem>>, vector<128x128xf32>
    %cst_35 = arith.constant dense<0.000000e+00> : vector<8x128xf32>
    %101 = tpu.matmul %99, %100, %cst_35 {dimension_numbers = #tpu.dot_dimension_numbers<[1], [0], [0], [1], [0, 0, 1, 1], [], []>} : vector<8x128xf32>, vector<128x128xf32>, vector<8x128xf32> -> vector<8x128xf32>
    %102 = vector.broadcast %10 : vector<1x128xf32> to vector<8x128xf32>
    %103 = arith.addf %101, %102 : vector<8x128xf32>
    %cst_36 = arith.constant 0.000000e+00 : f32
    %104 = vector.broadcast %cst_36 : f32 to vector<8x128xf32>
    %105 = arith.maximumf %103, %104 : vector<8x128xf32>
    %c0_37 = arith.constant 0 : index
    %c0_38 = arith.constant 0 : index
    %106 = vector.load %arg7[%c0_37, %c0_38] : memref<128x128xf32, #tpu.memory_space<vmem>>, vector<128x128xf32>
    %cst_39 = arith.constant dense<0.000000e+00> : vector<8x128xf32>
    %107 = tpu.matmul %105, %106, %cst_39 {dimension_numbers = #tpu.dot_dimension_numbers<[1], [0], [0], [1], [0, 0, 1, 1], [], []>} : vector<8x128xf32>, vector<128x128xf32>, vector<8x128xf32> -> vector<8x128xf32>
    %108 = vector.broadcast %11 : vector<1x128xf32> to vector<8x128xf32>
    %109 = arith.addf %107, %108 : vector<8x128xf32>
    %c0_40 = arith.constant 0 : index
    %c0_41 = arith.constant 0 : index
    %110 = vector.load %arg8[%c0_40, %c0_41] : memref<8x128xf32, #tpu.memory_space<vmem>>, vector<8x128xf32>
    tpu.vector_store %arg8[%c0_40, %c0_41], %109 {strides = array<i32>} : memref<8x128xf32, #tpu.memory_space<vmem>>, vector<8x128xf32>,
    return
  }
  func.func @transform_0(%arg0: i32) -> (i32, i32, i32) {
    %c0_i32 = arith.constant 0 : i32
    %c0_i32_0 = arith.constant 0 : i32
    %c0_i32_1 = arith.constant 0 : i32
    return %arg0, %c0_i32, %c0_i32_0 : i32, i32, i32
  }
  func.func @transform_1(%arg0: i32) -> (i32, i32) {
    %c0_i32 = arith.constant 0 : i32
    %c0_i32_0 = arith.constant 0 : i32
    %c0_i32_1 = arith.constant 0 : i32
    return %c0_i32, %c0_i32_0 : i32, i32
  }
  func.func @transform_2(%arg0: i32) -> (i32, i32) {
    %c0_i32 = arith.constant 0 : i32
    %c0_i32_0 = arith.constant 0 : i32
    %c0_i32_1 = arith.constant 0 : i32
    return %c0_i32, %c0_i32_0 : i32, i32
  }
  func.func @transform_3(%arg0: i32) -> (i32, i32) {
    %c0_i32 = arith.constant 0 : i32
    %c0_i32_0 = arith.constant 0 : i32
    %c0_i32_1 = arith.constant 0 : i32
    return %c0_i32, %c0_i32_0 : i32, i32
  }
  func.func @transform_4(%arg0: i32) -> (i32, i32) {
    %c0_i32 = arith.constant 0 : i32
    %c0_i32_0 = arith.constant 0 : i32
    %c0_i32_1 = arith.constant 0 : i32
    return %c0_i32, %c0_i32_0 : i32, i32
  }
  func.func @transform_5(%arg0: i32) -> (i32, i32) {
    %c0_i32 = arith.constant 0 : i32
    %c0_i32_0 = arith.constant 0 : i32
    %c0_i32_1 = arith.constant 0 : i32
    return %c0_i32, %c0_i32_0 : i32, i32
  }
  func.func @transform_6(%arg0: i32) -> (i32, i32) {
    %c0_i32 = arith.constant 0 : i32
    %c0_i32_0 = arith.constant 0 : i32
    %c0_i32_1 = arith.constant 0 : i32
    return %c0_i32, %c0_i32_0 : i32, i32
  }
  func.func @transform_7(%arg0: i32) -> (i32, i32) {
    %c0_i32 = arith.constant 0 : i32
    %c0_i32_0 = arith.constant 0 : i32
    return %arg0, %c0_i32 : i32, i32
  }
}

</mosaic_0001>

<bundles_post_ra>
// kernel: tpu_custom_call.1
= control target key start
LH: loop header
LB: loop body
LE: loop exit
PB: predicated region body
PF: predicated region fallthrough
CT: control target
= control target key end

     0   :  { %12 = vsyncpa [#allocation3], 0  ;;  %s2901_s0 = inlined_call_operand.vmem [shape: f32[8,16,128], index: 0, kind: input, shape index: {}]   ;;  %s2902_s1 = inlined_call_operand.hbm [shape: f32[9,128], index: 1, kind: input, shape index: {}]   ;;  %s2903_s2 = inlined_call_operand.vmem [shape: f32[1,512], index: 2, kind: input, shape index: {}]   ;;  %s2904_s3 = inlined_call_operand.vmem [shape: f32[128,4], index: 3, kind: input, shape index: {}]   ;;  %s2905_s4 = inlined_call_operand.hbm [shape: f32[128,1024], index: 4, kind: input, shape index: {}]   ;;  %s2906_s5 = inlined_call_operand.hbm [shape: f32[512,128], index: 5, kind: input, shape index: {}]   ;;  %s2907_s6 = inlined_call_operand.hbm [shape: f32[128,128], index: 6, kind: input, shape index: {}]   ;;  %s2908_s7 = inlined_call_operand.hbm [shape: f32[8,128], index: 7, kind: output, shape index: {}]  }
   0x1   :  { %13 = vsyncpa [#allocation6], 0 }
   0x2   :  { %14 = vsyncpa [#allocation9], 0  ;;  %s39_s26 = sshll.u32 %s2905_s4, 4  ;;  %s40_s26 = int_to_ptr.hbm [resolvable:$true] %s39_s26 }
   0x3   :  { %15 = vsyncpa [#allocation4], 0  ;;  %s2137_s27 = smov [#allocation5]   ;;  %s22_s8 = sshll.u32 %s2902_s1, 4  ;;  %s23_s8 = int_to_ptr.hbm [resolvable:$true] %s22_s8 }
   0x4   :  { %s41_s28 = sshll.u32 %s2137_s27, 4  ;;  %s2138_s9 = smov 1024   ;;  %s42_s28 = int_to_ptr.vmem [resolvable:$true] %s41_s28 }
   0x5   :  { %s2139_s10 = smov 64   ;;  %s2140_s11 = smov [#allocation2]  }
   0x6   :  { %47 = dma.hbm_to_vmem [thread:$0]  %s40_s26, 16384, %s42_s28, [#allocation6], %s2138_s9, %s2138_s9, %s2139_s10  }
   0x7   :  { %s24_s12 = sshll.u32 %s2140_s11, 4  ;;  %s2141_s13 = smov 128   ;;  %s25_s12 = int_to_ptr.vmem [resolvable:$true] %s24_s12 }
   0x8   :  { %s2142_s14 = smov 8   ;;  %s52_s16 = sshll.u32 %s2906_s5, 4  ;;  %s53_s16 = int_to_ptr.hbm [resolvable:$true] %s52_s16 }
   0x9   :  { %30 = dma.hbm_to_vmem [thread:$0]  %s23_s8, 256, %s25_s12, [#allocation3], %s2141_s13, %s2141_s13, %s2142_s14  }
   0xa   :  { %s2143_s17 = smov [#allocation7]   ;;  %s65_s20 = sshll.u32 %s2907_s6, 4  ;;  %s66_s20 = int_to_ptr.hbm [resolvable:$true] %s65_s20 }
   0xb   :  { %s54_s18 = sshll.u32 %s2143_s17, 4  ;;  %s2144_s21 = smov [#allocation8]   ;;  %s55_s18 = int_to_ptr.vmem [resolvable:$true] %s54_s18 }
   0xc   :  { %60 = dma.hbm_to_vmem [thread:$0]  %s53_s16, 8192, %s55_s18, [#allocation6], %s2141_s13, %s2141_s13, %s2142_s14  }
   0xd   :  { %s67_s22 = sshll.u32 %s2144_s21, 4  ;;  %s68_s22 = int_to_ptr.vmem [resolvable:$true] %s67_s22 }
   0xe   :  { %73 = dma.hbm_to_vmem [thread:$0]  %s66_s20, 2048, %s68_s22, [#allocation9], %s2141_s13, %s2141_s13, %s2142_s14  }
   0xf   :  { %2129 = dma.done.wait [#allocation3], 256  }
  0x10   :  { %2130 = vsyncadd [#allocation3], 4294967040 }
  0x11   :  { %2131 = dma.done.wait [#allocation6], 24576  }
  0x12   :  { %2132 = vsyncadd [#allocation6], 4294942720 }
  0x13   :  { %2133 = dma.done.wait [#allocation9], 2048  }
  0x14   :  { %2134 = vsyncadd [#allocation9], 4294965248  ;;  %v92_v0 = vld [vmem:[%s2901_s0 + $0x10] sm:$0xff]  ;;  %v90_v1 = vld [vmem:[%s2901_s0] sm:$0xff]  ;;  %v2145_v7 = vmov 128.0   ;;  %s1853_s10 = sshll.u32 %s2908_s7, 4  ;;  %s1854_s10 = int_to_ptr.hbm [resolvable:$true] %s1853_s10 }
  0x15   :  { %v94_v2 = vld [vmem:[%s2901_s0 + $0x20] sm:$0xff]  ;;  %112 = vadd.xlane.f32.xlu1 %v92_v0  ;;  %108 = vadd.xlane.f32.xlu0 %v90_v1  ;;  %v91_v3 = vld [vmem:[%s2901_s0 + $0x8] sm:$0xff]  ;;  %v93_v4 = vld [vmem:[%s2901_s0 + $0x18] sm:$0xff]  ;;  %1913 = vrcp.f32 %v2145_v7 }
  0x16   :  { %116 = vadd.xlane.f32.xlu2 %v94_v2  ;;  %v95_v5 = vld [vmem:[%s2901_s0 + $0x28] sm:$0xff]  ;;  %v96_v6 = vld [vmem:[%s2901_s0 + $0x30] sm:$0xff]  ;;  %v2246_v31 = vld [vmem:[%s2901_s0 + $0x38] sm:$0xff] }
  0x17   :  { %v2241_v30 = vld [vmem:[%s2901_s0 + $0x48] sm:$0xff]  ;;  %v499_v35 = vld [vmem:[#allocation5 + $0x3c0] sm:$0xff]  ;;  %v500_v36 = vld [vmem:[#allocation5 + $0x3c8] sm:$0xff] }
  0x18   :  { %v497_v37 = vld [vmem:[#allocation5 + $0x380] sm:$0xff]  ;;  %501 = vmatpush.msra.mxu0 %v499_v35  ;;  %v498_v38 = vld [vmem:[#allocation5 + $0x388] sm:$0xff]  ;;  %566 = vmatpush.msra.mxu1 %v500_v36  ;;  %v2264_v42 = vld [vmem:[%s2901_s0 + $0x40] sm:$0xff] }
  0x19   :  { %v2273_v46 = vld [vmem:[%s2901_s0 + $0x50] sm:$0xff]  ;;  %v2280_v48 = vld [vmem:[%s2901_s0 + $0x60] sm:$0xff]  ;;  %v2291_v51 = vld [vmem:[%s2901_s0 + $0x58] sm:$0xff] }
  0x1a   :  { %502 = vmatpush.msra.mxu0 %v497_v37  ;;  %567 = vmatpush.msra.mxu1 %v498_v38  ;;  %v2297_v52 = vld [vmem:[%s2901_s0 + $0x68] sm:$0xff]  ;;  %v495_v53 = vld [vmem:[#allocation5 + $0x340] sm:$0xff]  ;;  %v496_v54 = vld [vmem:[#allocation5 + $0x348] sm:$0xff] }
  0x1b   :  { %v1914_v8 = vpop.eup %1913  ;;  %v493_v55 = vld [vmem:[#allocation5 + $0x300] sm:$0xff]  ;;  %v494_v56 = vld [vmem:[#allocation5 + $0x308] sm:$0xff] }
  0x1c   :  { %v141_v9 = vmul.f32 128.0, %v1914_v8  ;;  %vm145_vm0 = vweird.f32 %v1914_v8  ;;  %503 = vmatpush.msra.mxu0 %v495_v53  ;;  %568 = vmatpush.msra.mxu1 %v496_v54  ;;  %v491_v57 = vld [vmem:[#allocation5 + $0x2c0] sm:$0xff]  ;;  %v492_v58 = vld [vmem:[#allocation5 + $0x2c8] sm:$0xff] }
  0x1d   :  { %110 = vadd.xlane.f32.xlu0 %v91_v3  ;;  %114 = vadd.xlane.f32.xlu1 %v93_v4  ;;  %v489_v59 = vld [vmem:[#allocation5 + $0x280] sm:$0xff]  ;;  %v490_v60 = vld [vmem:[#allocation5 + $0x288] sm:$0xff] }
  0x1e   :  { %118 = vadd.xlane.f32.xlu2 %v95_v5  ;;  %v142_v10 = vsub.f32 1.0, %v141_v9  ;;  %504 = vmatpush.msra.mxu0 %v493_v55  ;;  %v487_v61 = vld [vmem:[#allocation5 + $0x240] sm:$0xff]  ;;  %v488_v62 = vld [vmem:[#allocation5 + $0x248] sm:$0xff] }
  0x1f   :  { %569 = vmatpush.msra.mxu1 %v494_v56  ;;  %v485_v63 = vld [vmem:[#allocation5 + $0x200] sm:$0xff] }
  0x20   :  { %v143_v11 = vmul.f32 %v1914_v8, %v142_v10  ;;  %505 = vmatpush.msra.mxu0 %v491_v57  ;;  %v477_v7 = vld [vmem:[#allocation5 + $0x100] sm:$0xff]  ;;  %v476_v10 = vld [vmem:[#allocation5 + $0xc8] sm:$0xff] }
  0x21   :  { %570 = vmatpush.msra.mxu1 %v492_v58  ;;  %v475_v9 = vld [vmem:[#allocation5 + $0xc0] sm:$0xff] }
  0x22   :  { %v144_v12 = vadd.f32 %v1914_v8, %v143_v11  ;;  %506 = vmatpush.msra.mxu0 %v489_v59  ;;  %v473_v11 = vld [vmem:[#allocation5 + $0x80] sm:$0xff] }
  0x23   :  { %571 = vmatpush.msra.mxu1 %v490_v60 }
  0x24   :  { %v2221_v13 = vsel %vm145_vm0, %v1914_v8, %v144_v12  ;;  %507 = vmatpush.msra.mxu0 %v487_v61  ;;  %v478_v8 = vld [vmem:[#allocation5 + $0x108] sm:$0xff]  ;;  %v106_v61 = vld [vmem:[#allocation2] sm:$0xff] }
  0x25   :  { %120 = vadd.xlane.f32.xlu1 %v96_v6  ;;  %572 = vmatpush.msra.mxu1 %v488_v62  ;;  %v474_v12 = vld [vmem:[#allocation5 + $0x88] sm:$0xff] }
  0x26   :  { %508 = vmatpush.msra.mxu0 %v485_v63 }
  0x88   :  { %v113_v14 = vpop.xlane.xlu1 %112  ;;  %v109_v15 = vpop.xlane.xlu0 %108 }
  0x89   :  { %v149_v16 = vmul.f32 %v2221_v13, %v113_v14  ;;  %v147_v17 = vmul.f32 %v2221_v13, %v109_v15  ;;  %v117_v18 = vpop.xlane.xlu2 %116  ;;  %v471_v14 = vld [vmem:[#allocation5 + $0x40] sm:$0xff]  ;;  %v472_v15 = vld [vmem:[#allocation5 + $0x48] sm:$0xff] }
  0x8a   :  { %v151_v41 = vmul.f32 %v2221_v13, %v117_v18 }
  0x8b   :  { %v2225_v19 = vsub.f32 %v92_v0, %v149_v16  ;;  %v2227_v20 = vsub.f32 %v90_v1, %v147_v17  ;;  %v486_v0 = vld [vmem:[#allocation5 + $0x208] sm:$0xff]  ;;  %v483_v1 = vld [vmem:[#allocation5 + $0x1c0] sm:$0xff] }
  0x8c   :  { %v2266_v43 = vsub.f32 %v94_v2, %v151_v41  ;;  %573 = vmatpush.msra.mxu1 %v486_v0  ;;  %v484_v2 = vld [vmem:[#allocation5 + $0x1c8] sm:$0xff]  ;;  %509 = vmatpush.msra.mxu0 %v483_v1  ;;  %v469_v16 = vld [vmem:[#allocation5] sm:$0xff] }
  0x8d   :  { %v181_v21 = vmul.f32 %v2225_v19, %v2225_v19  ;;  %v179_v22 = vmul.f32 %v2227_v20, %v2227_v20  ;;  %v470_v17 = vld [vmem:[#allocation5 + $0x8] sm:$0xff]  ;;  %v2337_v1 = vld [vmem:[%s2901_s0 + $0x70] sm:$0xff] }
  0x8e   :  { %v183_v47 = vmul.f32 %v2266_v43, %v2266_v43  ;;  %574 = vmatpush.msra.mxu1 %v484_v2 }
  0x8f   :  { %199 = vadd.xlane.f32.xlu1 %v181_v21  ;;  %195 = vadd.xlane.f32.xlu0 %v179_v22 }
  0x90   :  { %v111_v23 = vpop.xlane.xlu0 %110  ;;  %v115_v24 = vpop.xlane.xlu1 %114 }
  0x91   :  { %v148_v25 = vmul.f32 %v2221_v13, %v111_v23  ;;  %v119_v26 = vpop.xlane.xlu2 %118  ;;  %v150_v29 = vmul.f32 %v2221_v13, %v115_v24 }
  0x92   :  { %v152_v28 = vmul.f32 %v2221_v13, %v119_v26 }
  0x93   :  { %v2234_v27 = vsub.f32 %v91_v3, %v148_v25  ;;  %v2254_v34 = vsub.f32 %v93_v4, %v150_v29  ;;  %v481_v3 = vld [vmem:[#allocation5 + $0x180] sm:$0xff]  ;;  %v482_v4 = vld [vmem:[#allocation5 + $0x188] sm:$0xff] }
  0x94   :  { %v2252_v33 = vsub.f32 %v95_v5, %v152_v28  ;;  %510 = vmatpush.msra.mxu0 %v481_v3  ;;  %575 = vmatpush.msra.mxu1 %v482_v4  ;;  %v479_v5 = vld [vmem:[#allocation5 + $0x140] sm:$0xff] }
  0x95   :  { %v180_v32 = vmul.f32 %v2234_v27, %v2234_v27  ;;  %v182_v40 = vmul.f32 %v2254_v34, %v2254_v34 }
  0x96   :  { %v184_v39 = vmul.f32 %v2252_v33, %v2252_v33  ;;  %511 = vmatpush.msra.mxu0 %v479_v5 }
  0x97   :  { %126 = vadd.xlane.f32.xlu1 %v2241_v30  ;;  %122 = vadd.xlane.f32.xlu0 %v2246_v31 }
  0x98   :  { %197 = vadd.xlane.f32.xlu2 %v180_v32  ;;  %v121_v44 = vpop.xlane.xlu1 %120  ;;  %512 = vmatpush.msra.mxu0 %v477_v7 }
  0x99   :  { %v153_v45 = vmul.f32 %v2221_v13, %v121_v44 }
  0x9a   :  { %513 = vmatpush.msra.mxu0 %v475_v9 }
  0x9b   :  { %v2283_v49 = vsub.f32 %v96_v6, %v153_v45  ;;  %v480_v6 = vld [vmem:[#allocation5 + $0x148] sm:$0xff] }
  0x9c   :  { %576 = vmatpush.msra.mxu1 %v480_v6  ;;  %514 = vmatpush.msra.mxu0 %v473_v11  ;;  %v2343_v6 = vperm.slane %v106_v61, 1  ;;  %v2349_v11 = vperm.slane %v106_v61, 2 }
  0x9d   :  { %v185_v50 = vmul.f32 %v2283_v49, %v2283_v49 }
  0x9e   :  { %577 = vmatpush.msra.mxu1 %v478_v8  ;;  %515 = vmatpush.msra.mxu0 %v471_v14 }
  0x9f   :  { %205 = vadd.xlane.f32.xlu1 %v184_v39  ;;  %201 = vadd.xlane.f32.xlu0 %v182_v40 }
  0xa0   :  { %124 = vadd.xlane.f32.xlu2 %v2264_v42  ;;  %578 = vmatpush.msra.mxu1 %v476_v10 }
  0xa1   :  { %516 = vmatpush.msra.mxu0 %v469_v16 }
  0xa2   :  { %579 = vmatpush.msra.mxu1 %v474_v12 }
  0xa4   :  { %580 = vmatpush.msra.mxu1 %v472_v15 }
  0xa6   :  { %581 = vmatpush.msra.mxu1 %v470_v17 }
  0xa7   :  { %128 = vadd.xlane.f32.xlu0 %v2273_v46  ;;  %132 = vadd.xlane.f32.xlu1 %v2280_v48 }
  0xa8   :  { %203 = vadd.xlane.f32.xlu2 %v183_v47 }
  0xaf   :  { %207 = vadd.xlane.f32.xlu0 %v185_v50 }
  0xb0   :  { %130 = vadd.xlane.f32.xlu2 %v2291_v51 }
  0xb7   :  { %134 = vadd.xlane.f32.xlu0 %v2297_v52 }
 0x102   :  { %v200_v18 = vpop.xlane.xlu1 %199  ;;  %v196_v21 = vpop.xlane.xlu0 %195 }
 0x103   :  { %v229_v22 = vmul.f32 %v200_v18, %v2221_v13  ;;  %v227_v23 = vmul.f32 %v196_v21, %v2221_v13 }
 0x105   :  { %v2302_v24 = vadd.f32 1e-05, %v229_v22  ;;  %v243_v25 = vadd.f32 1e-05, %v227_v23 }
 0x107   :  { %1915 = vrsqrt.f32 %v2302_v24  ;;  %vm265_vm2 = vweird.f32 %v243_v25  ;;  %vm285_vm4 = vweird.f32 %v2302_v24 }
 0x108   :  { %1917 = vrsqrt.f32 %v243_v25 }
 0x10a   :  { %v127_v26 = vpop.xlane.xlu1 %126  ;;  %v123_v28 = vpop.xlane.xlu0 %122 }
 0x10b   :  { %v156_v29 = vmul.f32 %v2221_v13, %v127_v26  ;;  %v198_v32 = vpop.xlane.xlu2 %197  ;;  %v154_v35 = vmul.f32 %v2221_v13, %v123_v28 }
 0x10c   :  { %v228_v36 = vmul.f32 %v198_v32, %v2221_v13 }
 0x10d   :  { %v2308_v37 = vpop.eup %1915  ;;  %v2311_v38 = vsub.f32 %v2241_v30, %v156_v29  ;;  %v2314_v39 = vsub.f32 %v2246_v31, %v154_v35 }
 0x10e   :  { %v1918_v40 = vpop.eup %1917  ;;  %v2316_v41 = vadd.f32 1e-05, %v228_v36  ;;  %v280_v44 = vmul.f32 %v2308_v37, %v2302_v24  ;;  %vm286_vm5 = vweird.f32 %v2308_v37 }
 0x10f   :  { %v260_v45 = vmul.f32 %v1918_v40, %v243_v25  ;;  %v188_v47 = vmul.f32 %v2311_v38, %v2311_v38  ;;  %v186_v50 = vmul.f32 %v2314_v39, %v2314_v39  ;;  %vm266_vm1 = vweird.f32 %v1918_v40  ;;  %vm2366_vm8 = vmor %vm285_vm4, %vm286_vm5 }
 0x110   :  { %1919 = vrsqrt.f32 %v2316_v41  ;;  %v281_v53 = vmul.f32 %v2308_v37, %v280_v44  ;;  %vm267_vm3 = vmor %vm265_vm2, %vm266_vm1  ;;  %vm275_vm6 = vweird.f32 %v2316_v41 }
 0x111   :  { %v261_v30 = vmul.f32 %v1918_v40, %v260_v45  ;;  %213 = vadd.xlane.f32.xlu0 %v188_v47  ;;  %209 = vadd.xlane.f32.xlu2 %v186_v50 }
 0x112   :  { %v202_v31 = vpop.xlane.xlu0 %201  ;;  %v206_v55 = vpop.xlane.xlu1 %205  ;;  %v282_v2 = vmul.f32 0.5, %v281_v53 }
 0x113   :  { %v262_v54 = vmul.f32 0.5, %v261_v30  ;;  %v125_v56 = vpop.xlane.xlu2 %124  ;;  %v230_v57 = vmul.f32 %v202_v31, %v2221_v13  ;;  %v232_v63 = vmul.f32 %v206_v55, %v2221_v13 }
 0x114   :  { %v155_v58 = vmul.f32 %v2221_v13, %v125_v56  ;;  %v283_v12 = vsub.f32 1.5, %v282_v2 }
 0x115   :  { %v263_v59 = vsub.f32 1.5, %v262_v54  ;;  %v2328_v60 = vadd.f32 1e-05, %v230_v57  ;;  %v2346_v8 = vadd.f32 1e-05, %v232_v63 }
 0x116   :  { %v1920_v62 = vpop.eup %1919  ;;  %v2332_v0 = vsub.f32 %v2264_v42, %v155_v58  ;;  %v284_v28 = vmul.f32 %v2308_v37, %v283_v12 }
 0x117   :  { %v264_v3 = vmul.f32 %v1918_v40, %v263_v59  ;;  %v270_v4 = vmul.f32 %v1920_v62, %v2316_v41  ;;  %1921 = vrsqrt.f32 %v2328_v60  ;;  %vm276_vm7 = vweird.f32 %v1920_v62 }
 0x118   :  { %v187_v5 = vmul.f32 %v2332_v0, %v2332_v0  ;;  %1923 = vrsqrt.f32 %v2346_v8  ;;  %vm277_vm9 = vmor %vm275_vm6, %vm276_vm7  ;;  %v288_v53 = vsel %vm2366_vm8, %v2308_v37, %v284_v28  ;;  %vm295_vm10 = vweird.f32 %v2328_v60 }
 0x119   :  { %v271_v42 = vmul.f32 %v1920_v62, %v270_v4  ;;  %136 = vadd.xlane.f32.xlu2 %v2337_v1  ;;  %v268_v7 = vsel %vm267_vm3, %v1918_v40, %v264_v3  ;;  %v421_v61 = vmul.f32 %v288_v53, %v2225_v19  ;;  %vm315_vm0 = vweird.f32 %v2346_v8 }
 0x11a   :  { %211 = vadd.xlane.f32.xlu1 %v187_v5  ;;  %v129_v9 = vpop.xlane.xlu0 %128  ;;  %v419_v10 = vmul.f32 %v268_v7, %v2227_v20  ;;  %v133_v17 = vpop.xlane.xlu1 %132  ;;  %vm631_vm6 = vcmask 31744  }
 0x11b   :  { %v272_v14 = vmul.f32 0.5, %v271_v42  ;;  %v204_v15 = vpop.xlane.xlu2 %203  ;;  %v157_v16 = vmul.f32 %v2221_v13, %v129_v9  ;;  %v159_v26 = vmul.f32 %v2221_v13, %v133_v17  ;;  %v438_v4 = vmul.f32 %v2343_v6, %v421_v61  ;;  %v965_v61 = vld [vmem:[%s2904_s3 + $0x68] sm:$0xff] }
 0x11c   :  { %v231_v18 = vmul.f32 %v204_v15, %v2221_v13  ;;  %v436_v21 = vmul.f32 %v2343_v6, %v419_v10 }
 0x11d   :  { %v273_v22 = vsub.f32 1.5, %v272_v14  ;;  %v2358_v20 = vsub.f32 %v2273_v46, %v157_v16  ;;  %v1922_v23 = vpop.eup %1921  ;;  %v2374_v46 = vld [vmem:[%s2901_s0 + $0x78] sm:$0xff]  ;;  %v2381_v44 = vsub.f32 %v2280_v48, %v159_v26  ;;  %v455_v15 = vadd.f32 %v2349_v11, %v438_v4 }
 0x11e   :  { %v2361_v25 = vadd.f32 1e-05, %v231_v18  ;;  %v453_v24 = vadd.f32 %v2349_v11, %v436_v21  ;;  %v290_v35 = vmul.f32 %v1922_v23, %v2328_v60  ;;  %v2388_v54 = vpop.eup %1923  ;;  %vm296_vm11 = vweird.f32 %v1922_v23 }
 0x11f   :  { %v274_v32 = vmul.f32 %v1920_v62, %v273_v22  ;;  %v189_v36 = vmul.f32 %v2358_v20, %v2358_v20  ;;  %v191_v37 = vmul.f32 %v2381_v44, %v2381_v44  ;;  %vm2403_vm12 = vmor %vm295_vm10, %vm296_vm11  ;;  %vm316_vm1 = vweird.f32 %v2388_v54 }
 0x120   :  { %1925 = vrsqrt.f32 %v2361_v25  ;;  %517 = vmatmul.f32.vlgmr.msra.gmra.mxu0 %v453_v24  ;;  %582 = vmatmul.f32.vlgmr.msra.gmra.mxu1 %v453_v24  ;;  %v291_v40 = vmul.f32 %v1922_v23, %v290_v35  ;;  %vm305_vm13 = vweird.f32 %v2361_v25  ;;  %vm317_vm2 = vmor %vm315_vm0, %vm316_vm1 }
 0x121   :  { %215 = vadd.xlane.f32.xlu2 %v189_v36  ;;  %v278_v41 = vsel %vm277_vm9, %v1920_v62, %v274_v32  ;;  %v310_v62 = vmul.f32 %v2388_v54, %v2346_v8 }
 0x122   :  { %138 = vadd.xlane.f32.xlu1 %v2374_v46  ;;  %v208_v45 = vpop.xlane.xlu0 %207  ;;  %v420_v47 = vmul.f32 %v278_v41, %v2234_v27  ;;  %v292_v50 = vmul.f32 0.5, %v291_v40 }
 0x123   :  { %v131_v30 = vpop.xlane.xlu2 %130  ;;  %v233_v31 = vmul.f32 %v208_v45, %v2221_v13  ;;  %v311_v5 = vmul.f32 %v2388_v54, %v310_v62 }
 0x124   :  { %v158_v55 = vmul.f32 %v2221_v13, %v131_v30  ;;  %v437_v56 = vmul.f32 %v2343_v6, %v420_v47  ;;  %v293_v57 = vsub.f32 1.5, %v292_v50 }
 0x125   :  { %v249_v48 = vadd.f32 1e-05, %v233_v31  ;;  %v312_v17 = vmul.f32 0.5, %v311_v5  ;;  %v964_v5 = vld [vmem:[%s2904_s3 + $0x60] sm:$0xff] }
 0x126   :  { %v1926_v27 = vpop.eup %1925  ;;  %v2394_v58 = vsub.f32 %v2291_v51, %v158_v55  ;;  %v454_v59 = vadd.f32 %v2349_v11, %v437_v56  ;;  %v294_v63 = vmul.f32 %v1922_v23, %v293_v57  ;;  %v967_v56 = vld [vmem:[%s2904_s3 + $0x78] sm:$0xff] }
 0x127   :  { %v300_v2 = vmul.f32 %v1926_v27, %v2361_v25  ;;  %1927 = vrsqrt.f32 %v249_v48  ;;  %vm306_vm14 = vweird.f32 %v1926_v27  ;;  %v313_v25 = vsub.f32 1.5, %v312_v17  ;;  %1865 = vmatpush.xpose.msk.msra.mxu2 %vm631_vm6, %v967_v56  ;;  %v960_v56 = vld [vmem:[%s2904_s3 + $0x40] sm:$0xff] }
 0x128   :  { %520 = vmatmul.f32.gmra.mxu0 %v454_v59  ;;  %585 = vmatmul.f32.gmra.mxu1 %v454_v59  ;;  %v190_v51 = vmul.f32 %v2394_v58, %v2394_v58  ;;  %v298_v9 = vsel %vm2403_vm12, %v1922_v23, %v294_v63  ;;  %vm307_vm15 = vmor %vm305_vm13, %vm306_vm14  ;;  %vm325_vm3 = vweird.f32 %v249_v48 }
 0x129   :  { %v301_v3 = vmul.f32 %v1926_v27, %v300_v2  ;;  %v422_v16 = vmul.f32 %v298_v9, %v2254_v34  ;;  %v314_v28 = vmul.f32 %v2388_v54, %v313_v25 }
 0x12a   :  { %219 = vadd.xlane.f32.xlu1 %v191_v37  ;;  %217 = vadd.xlane.f32.xlu0 %v190_v51  ;;  %v135_v19 = vpop.xlane.xlu0 %134 }
 0x12b   :  { %v302_v42 = vmul.f32 0.5, %v301_v3  ;;  %v160_v7 = vmul.f32 %v2221_v13, %v135_v19  ;;  %v439_v23 = vmul.f32 %v2343_v6, %v422_v16  ;;  %v318_v36 = vsel %vm317_vm2, %v2388_v54, %v314_v28 }
 0x12c   :  { %v424_v40 = vmul.f32 %v318_v36, %v2252_v33 }
 0x12d   :  { %v1928_v10 = vpop.eup %1927  ;;  %v303_v12 = vsub.f32 1.5, %v302_v42  ;;  %v2416_v14 = vsub.f32 %v2297_v52, %v160_v7  ;;  %v456_v34 = vadd.f32 %v2349_v11, %v439_v23 }
 0x12e   :  { %v320_v21 = vmul.f32 %v1928_v10, %v249_v48  ;;  %vm326_vm4 = vweird.f32 %v1928_v10  ;;  %v966_v48 = vld [vmem:[%s2904_s3 + $0x70] sm:$0xff] }
 0x12f   :  { %v304_v18 = vmul.f32 %v1926_v27, %v303_v12  ;;  %v192_v22 = vmul.f32 %v2416_v14, %v2416_v14  ;;  %vm327_vm5 = vmor %vm325_vm3, %vm326_vm4  ;;  %1866 = vmatpush.xpose.msk.msra.mxu2 %vm631_vm6, %v966_v48 }
 0x130   :  { %523 = vmatmul.f32.gmra.mxu0 %v455_v15  ;;  %588 = vmatmul.f32.gmra.mxu1 %v455_v15  ;;  %v321_v24 = vmul.f32 %v1928_v10, %v320_v21  ;;  %v963_v15 = vld [vmem:[%s2904_s3 + $0x58] sm:$0xff] }
 0x131   :  { %221 = vadd.xlane.f32.xlu2 %v192_v22  ;;  %v308_v52 = vsel %vm307_vm15, %v1926_v27, %v304_v18 }
 0x132   :  { %v423_v26 = vmul.f32 %v308_v52, %v2266_v43  ;;  %v322_v29 = vmul.f32 0.5, %v321_v24  ;;  %v441_v43 = vmul.f32 %v2343_v6, %v424_v40  ;;  %v962_v52 = vld [vmem:[%s2904_s3 + $0x50] sm:$0xff] }
 0x133   :  { %1867 = vmatpush.xpose.msk.msra.mxu2 %vm631_vm6, %v965_v61 }
 0x134   :  { %v440_v32 = vmul.f32 %v2343_v6, %v423_v26  ;;  %v323_v35 = vsub.f32 1.5, %v322_v29  ;;  %v458_v47 = vadd.f32 %v2349_v11, %v441_v43 }
 0x136   :  { %v457_v8 = vadd.f32 %v2349_v11, %v440_v32  ;;  %v324_v41 = vmul.f32 %v1928_v10, %v323_v35 }
 0x137   :  { %1868 = vmatpush.xpose.msk.msra.mxu2 %vm631_vm6, %v964_v5 }
 0x138   :  { %526 = vmatmul.f32.gmra.mxu0 %v456_v34  ;;  %591 = vmatmul.f32.gmra.mxu1 %v456_v34  ;;  %v328_v45 = vsel %vm327_vm5, %v1928_v10, %v324_v41 }
 0x139   :  { %v425_v50 = vmul.f32 %v328_v45, %v2283_v49 }
 0x13b   :  { %v442_v30 = vmul.f32 %v2343_v6, %v425_v50  ;;  %1869 = vmatpush.xpose.msk.msra.mxu2 %vm631_vm6, %v963_v15  ;;  %v958_v15 = vld [vmem:[%s2904_s3 + $0x30] sm:$0xff] }
 0x13d   :  { %v459_v31 = vadd.f32 %v2349_v11, %v442_v30 }
 0x13f   :  { %1870 = vmatpush.xpose.msk.msra.mxu2 %vm631_vm6, %v962_v52 }
 0x140   :  { %529 = vmatmul.f32.gmra.mxu0 %v457_v8  ;;  %594 = vmatmul.f32.gmra.mxu1 %v457_v8  ;;  %v961_v8 = vld [vmem:[%s2904_s3 + $0x48] sm:$0xff] }
 0x143   :  { %1871 = vmatpush.xpose.msk.msra.mxu2 %vm631_vm6, %v961_v8 }
 0x147   :  { %1872 = vmatpush.xpose.msk.msra.mxu2 %vm631_vm6, %v960_v56 }
 0x148   :  { %532 = vmatmul.f32.gmra.mxu0 %v458_v47  ;;  %597 = vmatmul.f32.gmra.mxu1 %v458_v47 }
 0x150   :  { %535 = vmatmul.f32.gmra.mxu0 %v459_v31  ;;  %600 = vmatmul.f32.gmra.mxu1 %v459_v31 }
 0x184   :  { %v210_v33 = vpop.xlane.xlu2 %209  ;;  %v214_v53 = vpop.xlane.xlu0 %213 }
 0x185   :  { %v234_v54 = vmul.f32 %v210_v33, %v2221_v13  ;;  %v236_v55 = vmul.f32 %v214_v53, %v2221_v13  ;;  %v955_v53 = vld [vmem:[%s2904_s3 + $0x18] sm:$0xff] }
 0x187   :  { %v250_v49 = vadd.f32 1e-05, %v234_v54  ;;  %v2443_v57 = vadd.f32 1e-05, %v236_v55 }
 0x189   :  { %1929 = vrsqrt.f32 %v250_v49  ;;  %vm335_vm8 = vweird.f32 %v250_v49  ;;  %vm355_vm10 = vweird.f32 %v2443_v57 }
 0x18a   :  { %1931 = vrsqrt.f32 %v2443_v57 }
 0x18c   :  { %v137_v27 = vpop.xlane.xlu2 %136 }
 0x18d   :  { %v212_v59 = vpop.xlane.xlu1 %211  ;;  %v161_v37 = vmul.f32 %v2221_v13, %v137_v27 }
 0x18e   :  { %v235_v62 = vmul.f32 %v212_v59, %v2221_v13 }
 0x18f   :  { %v1930_v63 = vpop.eup %1929  ;;  %v2457_v2 = vsub.f32 %v2337_v1, %v161_v37 }
 0x190   :  { %v2459_v60 = vpop.eup %1931  ;;  %v330_v51 = vmul.f32 %v1930_v63, %v250_v49  ;;  %v251_v3 = vadd.f32 1e-05, %v235_v62  ;;  %vm336_vm7 = vweird.f32 %v1930_v63  ;;  %v959_v62 = vld [vmem:[%s2904_s3 + $0x38] sm:$0xff] }
 0x191   :  { %v350_v19 = vmul.f32 %v2459_v60, %v2443_v57  ;;  %v193_v4 = vmul.f32 %v2457_v2, %v2457_v2  ;;  %vm337_vm9 = vmor %vm335_vm8, %vm336_vm7  ;;  %vm356_vm11 = vweird.f32 %v2459_v60  ;;  %1873 = vmatpush.xpose.msk.msra.mxu2 %vm631_vm6, %v959_v62 }
 0x192   :  { %v331_v42 = vmul.f32 %v1930_v63, %v330_v51  ;;  %1933 = vrsqrt.f32 %v251_v3  ;;  %vm2508_vm13 = vmor %vm355_vm10, %vm356_vm11  ;;  %vm345_vm14 = vweird.f32 %v251_v3 }
 0x193   :  { %223 = vadd.xlane.f32.xlu0 %v193_v4  ;;  %v351_v9 = vmul.f32 %v2459_v60, %v350_v19 }
 0x194   :  { %v332_v1 = vmul.f32 0.5, %v331_v42  ;;  %v216_v7 = vpop.xlane.xlu2 %215 }
 0x195   :  { %v139_v10 = vpop.xlane.xlu1 %138  ;;  %v237_v12 = vmul.f32 %v216_v7, %v2221_v13  ;;  %v352_v25 = vmul.f32 0.5, %v351_v9  ;;  %1874 = vmatpush.xpose.msk.msra.mxu2 %vm631_vm6, %v958_v15 }
 0x196   :  { %v333_v16 = vsub.f32 1.5, %v332_v1  ;;  %v162_v17 = vmul.f32 %v2221_v13, %v139_v10 }
 0x197   :  { %v2476_v18 = vadd.f32 1e-05, %v237_v12 }
 0x198   :  { %v1934_v21 = vpop.eup %1933  ;;  %v334_v22 = vmul.f32 %v1930_v63, %v333_v16  ;;  %v2479_v23 = vsub.f32 %v2374_v46, %v162_v17  ;;  %v353_v46 = vsub.f32 1.5, %v352_v25 }
 0x199   :  { %v340_v24 = vmul.f32 %v1934_v21, %v251_v3  ;;  %1935 = vrsqrt.f32 %v2476_v18  ;;  %vm346_vm12 = vweird.f32 %v1934_v21  ;;  %vm365_vm0 = vweird.f32 %v2476_v18 }
 0x19a   :  { %v194_v34 = vmul.f32 %v2479_v23, %v2479_v23  ;;  %v338_v26 = vsel %vm337_vm9, %v1930_v63, %v334_v22  ;;  %v354_v33 = vmul.f32 %v2459_v60, %v353_v46  ;;  %vm347_vm15 = vmor %vm345_vm14, %vm346_vm12 }
 0x19b   :  { %v341_v28 = vmul.f32 %v1934_v21, %v340_v24  ;;  %v426_v29 = vmul.f32 %v338_v26, %v2314_v39  ;;  %v957_v24 = vld [vmem:[%s2904_s3 + $0x28] sm:$0xff] }
 0x19c   :  { %225 = vadd.xlane.f32.xlu1 %v194_v34  ;;  %v358_v61 = vsel %vm2508_vm13, %v2459_v60, %v354_v33  ;;  %1875 = vmatpush.xpose.msk.msra.mxu2 %vm631_vm6, %v957_v24 }
 0x19d   :  { %v342_v32 = vmul.f32 0.5, %v341_v28  ;;  %v220_v35 = vpop.xlane.xlu1 %219  ;;  %v443_v36 = vmul.f32 %v2343_v6, %v426_v29  ;;  %v2496_v41 = vpop.f32.mrf.mxu1  ;;  %v428_v7 = vmul.f32 %v358_v61, %v2311_v38 }
 0x19e   :  { %v239_v40 = vmul.f32 %v220_v35, %v2221_v13  ;;  %v218_v43 = vpop.xlane.xlu0 %217 }
 0x19f   :  { %v2499_v39 = vpop.eup %1935  ;;  %v343_v45 = vsub.f32 1.5, %v342_v32  ;;  %v238_v47 = vmul.f32 %v218_v43, %v2221_v13  ;;  %v460_v50 = vadd.f32 %v2349_v11, %v443_v36  ;;  %v445_v22 = vmul.f32 %v2343_v6, %v428_v7 }
 0x1a0   :  { %v360_v30 = vmul.f32 %v2499_v39, %v2476_v18  ;;  %v2505_v31 = vadd.f32 1e-05, %v239_v40  ;;  %vm366_vm1 = vweird.f32 %v2499_v39  ;;  %v956_v40 = vld [vmem:[%s2904_s3 + $0x20] sm:$0xff] }
 0x1a1   :  { %v344_v54 = vmul.f32 %v1934_v21, %v343_v45  ;;  %v254_v55 = vadd.f32 1e-05, %v238_v47  ;;  %538 = vmatmul.f32.gmra.mxu0 %v460_v50  ;;  %603 = vmatmul.f32.gmra.mxu1 %v460_v50  ;;  %vm2543_vm2 = vmor %vm365_vm0, %vm366_vm1  ;;  %v462_v36 = vadd.f32 %v2349_v11, %v445_v22 }
 0x1a2   :  { %v361_v49 = vmul.f32 %v2499_v39, %v360_v30  ;;  %1937 = vrsqrt.f32 %v2505_v31  ;;  %1876 = vmatpush.xpose.msk.msra.mxu2 %vm631_vm6, %v956_v40  ;;  %vm385_vm7 = vweird.f32 %v2505_v31 }
 0x1a3   :  { %1939 = vrsqrt.f32 %v254_v55  ;;  %v348_v57 = vsel %vm347_vm15, %v1934_v21, %v344_v54  ;;  %vm375_vm3 = vweird.f32 %v254_v55 }
 0x1a4   :  { %v362_v48 = vmul.f32 0.5, %v361_v49  ;;  %v222_v27 = vpop.xlane.xlu2 %221  ;;  %v427_v59 = vmul.f32 %v348_v57, %v2332_v0  ;;  %v632_v0 = vsel %vm631_vm6, %v2496_v41, -inf }
 0x1a5   :  { %v240_v37 = vmul.f32 %v222_v27, %v2221_v13  ;;  %v2528_v51 = vpop.f32.mrf.mxu1 }
 0x1a6   :  { %v363_v63 = vsub.f32 1.5, %v362_v48  ;;  %v444_v3 = vmul.f32 %v2343_v6, %v427_v59  ;;  %v633_v60 = vsel %vm631_vm6, %v2528_v51, -inf  ;;  %1877 = vmatpush.xpose.msk.msra.mxu2 %vm631_vm6, %v955_v53 }
 0x1a7   :  { %v2536_v19 = vadd.f32 1e-05, %v240_v37  ;;  %v634_v42 = vmax.f32 %v632_v0, %v633_v60 }
 0x1a8   :  { %v2538_v4 = vpop.eup %1937  ;;  %v364_v5 = vmul.f32 %v2499_v39, %v363_v63  ;;  %v461_v1 = vadd.f32 %v2349_v11, %v444_v3  ;;  %v954_v63 = vld [vmem:[%s2904_s3 + $0x10] sm:$0xff] }
 0x1a9   :  { %v1940_v9 = vpop.eup %1939  ;;  %v380_v12 = vmul.f32 %v2538_v4, %v2505_v31  ;;  %1941 = vrsqrt.f32 %v2536_v19  ;;  %v635_v17 = vrot.slane %v634_v42, 4  ;;  %vm386_vm8 = vweird.f32 %v2538_v4 }
 0x1aa   :  { %v370_v16 = vmul.f32 %v1940_v9, %v254_v55  ;;  %541 = vmatmul.f32.gmra.mxu0 %v461_v1  ;;  %606 = vmatmul.f32.gmra.mxu1 %v461_v1  ;;  %v368_v25 = vsel %vm2543_vm2, %v2499_v39, %v364_v5  ;;  %vm376_vm4 = vweird.f32 %v1940_v9  ;;  %vm2597_vm9 = vmor %vm385_vm7, %vm386_vm8  ;;  %v953_v5 = vld [vmem:[%s2904_s3 + $0x8] sm:$0xff]  ;;  %vm395_vm10 = vweird.f32 %v2536_v19 }
 0x1ab   :  { %v381_v38 = vmul.f32 %v2538_v4, %v380_v12  ;;  %v636_v21 = vmax.f32 %v634_v42, %v635_v17  ;;  %v429_v46 = vmul.f32 %v368_v25, %v2358_v20  ;;  %vm2574_vm5 = vmor %vm375_vm3, %vm376_vm4  ;;  %1878 = vmatpush.xpose.msk.msra.mxu2 %vm631_vm6, %v954_v63 }
 0x1ac   :  { %v371_v18 = vmul.f32 %v1940_v9, %v370_v16 }
 0x1ad   :  { %v637_v34 = vrot.slane %v636_v21, 2  ;;  %v2562_v26 = vpop.f32.mrf.mxu1  ;;  %v382_v29 = vmul.f32 0.5, %v381_v38  ;;  %v446_v47 = vmul.f32 %v2343_v6, %v429_v46 }
 0x1ae   :  { %v372_v52 = vmul.f32 0.5, %v371_v18  ;;  %v641_v57 = vsel %vm631_vm6, %v2562_v26, -inf }
 0x1af   :  { %v2564_v28 = vpop.eup %1941  ;;  %v638_v35 = vmax.f32 %v636_v21, %v637_v34  ;;  %v383_v20 = vsub.f32 1.5, %v382_v29  ;;  %v463_v27 = vadd.f32 %v2349_v11, %v446_v47  ;;  %1879 = vmatpush.xpose.msk.msra.mxu2 %vm631_vm6, %v953_v5 }
 0x1b0   :  { %v373_v32 = vsub.f32 1.5, %v372_v52  ;;  %v390_v8 = vmul.f32 %v2564_v28, %v2536_v19  ;;  %vm396_vm11 = vweird.f32 %v2564_v28  ;;  %v952_v19 = vld [vmem:[%s2904_s3] sm:$0xff] }
 0x1b1   :  { %v639_v45 = vrot.slane %v638_v35, 1  ;;  %v384_v49 = vmul.f32 %v2538_v4, %v383_v20  ;;  %vm2631_vm12 = vmor %vm395_vm10, %vm396_vm11 }
 0x1b2   :  { %v374_v43 = vmul.f32 %v1940_v9, %v373_v32  ;;  %544 = vmatmul.f32.gmra.mxu0 %v462_v36  ;;  %609 = vmatmul.f32.gmra.mxu1 %v462_v36  ;;  %v391_v30 = vmul.f32 %v2564_v28, %v390_v8 }
 0x1b3   :  { %v640_v50 = vmax.f32 %v638_v35, %v639_v45  ;;  %1880 = vmatpush.xpose.msk.msra.mxu2 %vm631_vm6, %v952_v19 }
 0x1b4   :  { %v378_v33 = vsel %vm2574_vm5, %v1940_v9, %v374_v43  ;;  %v392_v62 = vmul.f32 0.5, %v391_v30 }
 0x1b5   :  { %v704_v54 = vsub.f32 %v2496_v41, %v640_v50  ;;  %v705_v55 = vsub.f32 %v2528_v51, %v640_v50  ;;  %v592_v56 = vpop.f32.mrf.mxu1  ;;  %v430_v61 = vmul.f32 %v378_v33, %v2394_v58  ;;  %v388_v58 = vsel %vm2597_vm9, %v2538_v4, %v384_v49 }
 0x1b6   :  { %v642_v48 = vsel %vm631_vm6, %v592_v56, -inf  ;;  %v393_v60 = vsub.f32 1.5, %v392_v62  ;;  %v431_v7 = vmul.f32 %v388_v58, %v2381_v44 }
 0x1b7   :  { %v720_v59 = vmul.f32 1.442695, %v704_v54  ;;  %v722_v31 = vmul.f32 1.442695, %v705_v55  ;;  %v643_v37 = vmax.f32 %v641_v57, %v642_v48  ;;  %v447_v0 = vmul.f32 %v2343_v6, %v430_v61 }
 0x1b8   :  { %v394_v16 = vmul.f32 %v2564_v28, %v393_v60  ;;  %v448_v21 = vmul.f32 %v2343_v6, %v431_v7 }
 0x1b9   :  { %1943 = vpow2.f32 %v720_v59  ;;  %v644_v51 = vrot.slane %v643_v37, 4  ;;  %v464_v4 = vadd.f32 %v2349_v11, %v447_v0 }
 0x1ba   :  { %547 = vmatmul.f32.gmra.mxu0 %v463_v27  ;;  %612 = vmatmul.f32.gmra.mxu1 %v463_v27  ;;  %1945 = vpow2.f32 %v722_v31  ;;  %v398_v24 = vsel %vm2631_vm12, %v2564_v28, %v394_v16  ;;  %v465_v36 = vadd.f32 %v2349_v11, %v448_v21 }
 0x1bb   :  { %v645_v3 = vmax.f32 %v643_v37, %v644_v51  ;;  %v432_v39 = vmul.f32 %v398_v24, %v2416_v14 }
 0x1bd   :  { %v646_v42 = vrot.slane %v645_v3, 2  ;;  %v2612_v1 = vpop.f32.mrf.mxu1  ;;  %v449_v47 = vmul.f32 %v2343_v6, %v432_v39 }
 0x1be   :  { %v650_v32 = vsel %vm631_vm6, %v2612_v1, -inf }
 0x1bf   :  { %v2618_v9 = vpop.eup %1943  ;;  %v647_v10 = vmax.f32 %v645_v3, %v646_v42  ;;  %v466_v55 = vadd.f32 %v2349_v11, %v449_v47 }
 0x1c0   :  { %v2621_v12 = vpop.eup %1945  ;;  %v752_v15 = vsel %vm631_vm6, %v2618_v9, 0.0 }
 0x1c1   :  { %v753_v44 = vsel %vm631_vm6, %v2621_v12, 0.0  ;;  %v648_v38 = vrot.slane %v647_v10, 1 }
 0x1c2   :  { %550 = vmatmul.f32.gmra.mxu0 %v464_v4  ;;  %615 = vmatmul.f32.gmra.mxu1 %v464_v4  ;;  %v754_v18 = vadd.f32 %v753_v44, %v752_v15 }
 0x1c3   :  { %v649_v22 = vmax.f32 %v647_v10, %v648_v38 }
 0x1c4   :  { %v755_v25 = vrot.slane %v754_v18, 4 }
 0x1c5   :  { %v706_v52 = vsub.f32 %v2562_v26, %v649_v22  ;;  %v707_v34 = vsub.f32 %v592_v56, %v649_v22  ;;  %v598_v29 = vpop.f32.mrf.mxu1 }
 0x1c6   :  { %v756_v46 = vadd.f32 %v755_v25, %v754_v18  ;;  %v651_v35 = vsel %vm631_vm6, %v598_v29, -inf }
 0x1c7   :  { %v724_v8 = vmul.f32 1.442695, %v706_v52  ;;  %v726_v40 = vmul.f32 1.442695, %v707_v34  ;;  %v652_v43 = vmax.f32 %v650_v32, %v651_v35 }
 0x1c8   :  { %v757_v45 = vrot.slane %v756_v46, 2 }
 0x1c9   :  { %1947 = vpow2.f32 %v724_v8  ;;  %v653_v28 = vrot.slane %v652_v43, 4 }
 0x1ca   :  { %553 = vmatmul.f32.gmra.mxu0 %v465_v36  ;;  %618 = vmatmul.f32.gmra.mxu1 %v465_v36  ;;  %v758_v26 = vadd.f32 %v757_v45, %v756_v46  ;;  %1949 = vpow2.f32 %v726_v40 }
 0x1cb   :  { %v654_v20 = vmax.f32 %v652_v43, %v653_v28 }
 0x1cc   :  { %v759_v50 = vrot.slane %v758_v26, 1 }
 0x1cd   :  { %v655_v30 = vrot.slane %v654_v20, 2 }
 0x1ce   :  { %v760_v33 = vadd.f32 %v759_v50, %v758_v26 }
 0x1cf   :  { %v2647_v53 = vpop.eup %1947  ;;  %v656_v54 = vmax.f32 %v654_v20, %v655_v30 }
 0x1d0   :  { %v2650_v56 = vpop.eup %1949  ;;  %1951 = vrcp.f32 %v760_v33  ;;  %v761_v14 = vsel %vm631_vm6, %v2647_v53, 0.0  ;;  %v835_v60 = vand.u32 2147483648, %v760_v33  ;;  %v833_v42 = vand.u32 2147483647, %v760_v33 }
 0x1d1   :  { %v762_v49 = vsel %vm631_vm6, %v2650_v56, 0.0  ;;  %v657_v57 = vrot.slane %v656_v54, 1  ;;  %vm829_vm14 = vweird.f32 %v760_v33 }
 0x1d2   :  { %556 = vmatmul.f32.gmra.mxu0 %v466_v55  ;;  %621 = vmatmul.f32.gmra.mxu1 %v466_v55  ;;  %v763_v48 = vadd.f32 %v762_v49, %v761_v14  ;;  %vm834_vm0 = vcmp.eq.f32.partialorder %v833_v42, 8.507059e+37 }
 0x1d3   :  { %v658_v27 = vmax.f32 %v656_v54, %v657_v57 }
 0x1d4   :  { %v764_v59 = vrot.slane %v763_v48, 4 }
 0x1d5   :  { %v708_v31 = vsub.f32 %v2612_v1, %v658_v27  ;;  %v709_v37 = vsub.f32 %v598_v29, %v658_v27  ;;  %v836_v1 = vor.u32 1.1754944e-38, %v835_v60 }
 0x1d6   :  { %v1952_v61 = vpop.eup %1951  ;;  %v765_v41 = vadd.f32 %v764_v59, %v763_v48 }
 0x1d7   :  { %v728_v62 = vmul.f32 1.442695, %v708_v31  ;;  %v730_v63 = vmul.f32 1.442695, %v709_v37  ;;  %v825_v51 = vmul.f32 %v1952_v61, %v760_v33  ;;  %vm830_vm13 = vweird.f32 %v1952_v61 }
 0x1d8   :  { %v766_v3 = vrot.slane %v765_v41, 2  ;;  %vm831_vm15 = vmor %vm829_vm14, %vm830_vm13 }
 0x1d9   :  { %1953 = vpow2.f32 %v728_v62  ;;  %v826_v0 = vsub.f32 1.0, %v825_v51  ;;  %v601_v51 = vpop.f32.mrf.mxu1 }
 0x1da   :  { %v767_v58 = vadd.f32 %v766_v3, %v765_v41  ;;  %1955 = vpow2.f32 %v730_v63 }
 0x1db   :  { %v827_v5 = vmul.f32 %v1952_v61, %v826_v0 }
 0x1dc   :  { %v768_v7 = vrot.slane %v767_v58, 1 }
 0x1dd   :  { %v828_v10 = vadd.f32 %v1952_v61, %v827_v5 }
 0x1de   :  { %v769_v4 = vadd.f32 %v768_v7, %v767_v58 }
 0x1df   :  { %v1954_v15 = vpop.eup %1953  ;;  %v832_v16 = vsel %vm831_vm15, %v1952_v61, %v828_v10 }
 0x1e0   :  { %v1956_v19 = vpop.eup %1955  ;;  %1957 = vrcp.f32 %v769_v4  ;;  %v770_v44 = vsel %vm631_vm6, %v1954_v15, 0.0  ;;  %v837_v17 = vsel %vm834_vm0, %v836_v1, %v832_v16  ;;  %v851_v35 = vand.u32 2147483648, %v769_v4 }
 0x1e1   :  { %v771_v38 = vsel %vm631_vm6, %v1956_v19, 0.0  ;;  %v838_v18 = vmul.f32 %v2618_v9, %v837_v17  ;;  %v839_v29 = vmul.f32 %v2621_v12, %v837_v17  ;;  %v849_v8 = vand.u32 2147483647, %v769_v4 }
 0x1e2   :  { %v772_v21 = vadd.f32 %v771_v38, %v770_v44  ;;  %vm845_vm2 = vweird.f32 %v769_v4  ;;  %v852_v39 = vor.u32 1.1754944e-38, %v851_v35  ;;  %v659_v1 = vsel %vm631_vm6, %v601_v51, -inf }
 0x1e3   :  { %1881 = vmatmul.msk.f32.vlgmr.msra.gmra.mxu2 %vm631_vm6, %v838_v18  ;;  %vm850_vm4 = vcmp.eq.f32.partialorder %v849_v8, 8.507059e+37 }
 0x1e4   :  { %v773_v22 = vrot.slane %v772_v21, 4 }
 0x1e6   :  { %v1958_v25 = vpop.eup %1957  ;;  %v774_v24 = vadd.f32 %v773_v22, %v772_v21 }
 0x1e7   :  { %v841_v52 = vmul.f32 %v1958_v25, %v769_v4  ;;  %vm846_vm1 = vweird.f32 %v1958_v25 }
 0x1e8   :  { %v775_v34 = vrot.slane %v774_v24, 2  ;;  %vm847_vm3 = vmor %vm845_vm2, %vm846_vm1 }
 0x1e9   :  { %v842_v46 = vsub.f32 1.0, %v841_v52 }
 0x1ea   :  { %v776_v32 = vadd.f32 %v775_v34, %v774_v24 }
 0x1eb   :  { %1882 = vmatmul.msk.f32.gmra.mxu2 %vm631_vm6, %v839_v29  ;;  %v843_v36 = vmul.f32 %v1958_v25, %v842_v46 }
 0x1ec   :  { %v777_v40 = vrot.slane %v776_v32, 1 }
 0x1ed   :  { %v844_v9 = vadd.f32 %v1958_v25, %v843_v36 }
 0x1ee   :  { %v778_v43 = vadd.f32 %v777_v40, %v776_v32 }
 0x1ef   :  { %v848_v45 = vsel %vm847_vm3, %v1958_v25, %v844_v9 }
 0x1f0   :  { %1959 = vrcp.f32 %v778_v43  ;;  %v853_v28 = vsel %vm850_vm4, %v852_v39, %v848_v45  ;;  %v867_v30 = vand.u32 2147483648, %v778_v43  ;;  %v865_v54 = vand.u32 2147483647, %v778_v43 }
 0x1f1   :  { %v854_v12 = vmul.f32 %v2647_v53, %v853_v28  ;;  %v855_v47 = vmul.f32 %v2650_v56, %v853_v28  ;;  %vm861_vm7 = vweird.f32 %v778_v43 }
 0x1f2   :  { %v868_v14 = vor.u32 1.1754944e-38, %v867_v30  ;;  %vm866_vm9 = vcmp.eq.f32.partialorder %v865_v54, 8.507059e+37 }
 0x1f3   :  { %1883 = vmatmul.msk.f32.gmra.mxu2 %vm631_vm6, %v854_v12 }
 0x1f6   :  { %v1960_v26 = vpop.eup %1959 }
 0x1f7   :  { %v857_v20 = vmul.f32 %v1960_v26, %v778_v43  ;;  %vm862_vm5 = vweird.f32 %v1960_v26 }
 0x1f8   :  { %vm863_vm8 = vmor %vm861_vm7, %vm862_vm5 }
 0x1f9   :  { %v858_v50 = vsub.f32 1.0, %v857_v20 }
 0x1fb   :  { %1884 = vmatmul.msk.f32.gmra.mxu2 %vm631_vm6, %v855_v47  ;;  %v859_v33 = vmul.f32 %v1960_v26, %v858_v50 }
 0x1fd   :  { %v860_v55 = vadd.f32 %v1960_v26, %v859_v33 }
 0x1ff   :  { %v864_v49 = vsel %vm863_vm8, %v1960_v26, %v860_v55 }
 0x200   :  { %v869_v53 = vsel %vm866_vm9, %v868_v14, %v864_v49 }
 0x201   :  { %v870_v57 = vmul.f32 %v1954_v15, %v869_v53  ;;  %v871_v59 = vmul.f32 %v1956_v19, %v869_v53 }
 0x203   :  { %1885 = vmatmul.msk.f32.gmra.mxu2 %vm631_vm6, %v870_v57 }
 0x206   :  { %v224_v48 = vpop.xlane.xlu0 %223 }
 0x207   :  { %v241_v56 = vmul.f32 %v224_v48, %v2221_v13 }
 0x209   :  { %v257_v27 = vadd.f32 1e-05, %v241_v56 }
 0x20b   :  { %1961 = vrsqrt.f32 %v257_v27  ;;  %1886 = vmatmul.msk.f32.gmra.mxu2 %vm631_vm6, %v871_v59  ;;  %vm405_vm11 = vweird.f32 %v257_v27 }
 0x20f   :  { %v226_v31 = vpop.xlane.xlu1 %225 }
 0x210   :  { %v242_v37 = vmul.f32 %v226_v31, %v2221_v13 }
 0x211   :  { %v1962_v61 = vpop.eup %1961 }
 0x212   :  { %v400_v41 = vmul.f32 %v1962_v61, %v257_v27  ;;  %v258_v62 = vadd.f32 1e-05, %v242_v37  ;;  %vm406_vm10 = vweird.f32 %v1962_v61 }
 0x213   :  { %vm407_vm12 = vmor %vm405_vm11, %vm406_vm10 }
 0x214   :  { %v401_v63 = vmul.f32 %v1962_v61, %v400_v41  ;;  %1963 = vrsqrt.f32 %v258_v62  ;;  %vm415_vm14 = vweird.f32 %v258_v62 }
 0x216   :  { %v402_v3 = vmul.f32 0.5, %v401_v63 }
 0x218   :  { %v403_v0 = vsub.f32 1.5, %v402_v3 }
 0x21a   :  { %v1964_v58 = vpop.eup %1963  ;;  %v404_v60 = vmul.f32 %v1962_v61, %v403_v0 }
 0x21b   :  { %v410_v5 = vmul.f32 %v1964_v58, %v258_v62  ;;  %vm416_vm13 = vweird.f32 %v1964_v58 }
 0x21c   :  { %v408_v42 = vsel %vm407_vm12, %v1962_v61, %v404_v60  ;;  %vm417_vm15 = vmor %vm415_vm14, %vm416_vm13 }
 0x21d   :  { %v411_v7 = vmul.f32 %v1964_v58, %v410_v5  ;;  %v433_v10 = vmul.f32 %v408_v42, %v2457_v2 }
 0x21e   :  { %v604_v4 = vpop.f32.mrf.mxu1 }
 0x21f   :  { %v412_v15 = vmul.f32 0.5, %v411_v7  ;;  %v660_v16 = vsel %vm631_vm6, %v604_v4, -inf  ;;  %v450_v19 = vmul.f32 %v2343_v6, %v433_v10 }
 0x220   :  { %v661_v44 = vmax.f32 %v659_v1, %v660_v16 }
 0x221   :  { %v413_v17 = vsub.f32 1.5, %v412_v15  ;;  %v467_v38 = vadd.f32 %v2349_v11, %v450_v19 }
 0x222   :  { %v662_v18 = vrot.slane %v661_v44, 4 }
 0x223   :  { %v414_v21 = vmul.f32 %v1964_v58, %v413_v17  ;;  %559 = vmatmul.f32.gmra.mxu0 %v467_v38  ;;  %624 = vmatmul.f32.gmra.mxu1 %v467_v38 }
 0x224   :  { %v663_v2 = vmax.f32 %v661_v44, %v662_v18 }
 0x225   :  { %v418_v22 = vsel %vm417_vm15, %v1964_v58, %v414_v21 }
 0x226   :  { %v664_v25 = vrot.slane %v663_v2, 2  ;;  %v434_v24 = vmul.f32 %v418_v22, %v2479_v23 }
 0x227   :  { %v607_v52 = vpop.f32.mrf.mxu1 }
 0x228   :  { %v665_v34 = vmax.f32 %v663_v2, %v664_v25  ;;  %v451_v29 = vmul.f32 %v2343_v6, %v434_v24  ;;  %v668_v39 = vsel %vm631_vm6, %v607_v52, -inf }
 0x22a   :  { %v666_v46 = vrot.slane %v665_v34, 1  ;;  %v468_v32 = vadd.f32 %v2349_v11, %v451_v29 }
 0x22c   :  { %v667_v35 = vmax.f32 %v665_v34, %v666_v46  ;;  %562 = vmatmul.f32.gmra.mxu0 %v468_v32  ;;  %627 = vmatmul.f32.gmra.mxu1 %v468_v32 }
 0x22e   :  { %v710_v36 = vsub.f32 %v601_v51, %v667_v35  ;;  %v711_v8 = vsub.f32 %v604_v4, %v667_v35 }
 0x22f   :  { %v610_v40 = vpop.f32.mrf.mxu1 }
 0x230   :  { %v732_v9 = vmul.f32 1.442695, %v710_v36  ;;  %v734_v43 = vmul.f32 1.442695, %v711_v8  ;;  %v669_v45 = vsel %vm631_vm6, %v610_v40, -inf }
 0x231   :  { %v670_v23 = vmax.f32 %v668_v39, %v669_v45 }
 0x232   :  { %1965 = vpow2.f32 %v732_v9 }
 0x233   :  { %1967 = vpow2.f32 %v734_v43  ;;  %v671_v28 = vrot.slane %v670_v23, 4 }
 0x235   :  { %v672_v6 = vmax.f32 %v670_v23, %v671_v28 }
 0x237   :  { %v673_v12 = vrot.slane %v672_v6, 2  ;;  %v613_v26 = vpop.f32.mrf.mxu1 }
 0x238   :  { %v2681_v11 = vpop.eup %1965  ;;  %v677_v56 = vsel %vm631_vm6, %v613_v26, -inf }
 0x239   :  { %v2683_v20 = vpop.eup %1967  ;;  %v779_v47 = vsel %vm631_vm6, %v2681_v11, 0.0  ;;  %v674_v50 = vmax.f32 %v672_v6, %v673_v12 }
 0x23a   :  { %v780_v30 = vsel %vm631_vm6, %v2683_v20, 0.0 }
 0x23b   :  { %v781_v33 = vadd.f32 %v780_v30, %v779_v47  ;;  %v675_v54 = vrot.slane %v674_v50, 1 }
 0x23d   :  { %v782_v55 = vrot.slane %v781_v33, 4  ;;  %v676_v14 = vmax.f32 %v674_v50, %v675_v54 }
 0x23f   :  { %v783_v49 = vadd.f32 %v782_v55, %v781_v33  ;;  %v712_v53 = vsub.f32 %v607_v52, %v676_v14  ;;  %v713_v57 = vsub.f32 %v610_v40, %v676_v14  ;;  %v616_v48 = vpop.f32.mrf.mxu1  ;;  %v518_v14 = vpop.f32.mrf.mxu0 }
 0x240   :  { %v678_v27 = vsel %vm631_vm6, %v616_v48, -inf }
 0x241   :  { %v784_v59 = vrot.slane %v783_v49, 2  ;;  %v736_v31 = vmul.f32 1.442695, %v712_v53  ;;  %v738_v37 = vmul.f32 1.442695, %v713_v57  ;;  %v679_v61 = vmax.f32 %v677_v56, %v678_v27 }
 0x243   :  { %v785_v41 = vadd.f32 %v784_v59, %v783_v49  ;;  %1969 = vpow2.f32 %v736_v31  ;;  %v680_v62 = vrot.slane %v679_v61, 4 }
 0x244   :  { %1971 = vpow2.f32 %v738_v37 }
 0x245   :  { %v786_v63 = vrot.slane %v785_v41, 1  ;;  %v681_v51 = vmax.f32 %v679_v61, %v680_v62 }
 0x247   :  { %v787_v3 = vadd.f32 %v786_v63, %v785_v41  ;;  %v682_v0 = vrot.slane %v681_v51, 2  ;;  %v619_v58 = vpop.f32.mrf.mxu1 }
 0x248   :  { %v686_v21 = vsel %vm631_vm6, %v619_v58, -inf }
 0x249   :  { %v2691_v60 = vpop.eup %1969  ;;  %1973 = vrcp.f32 %v787_v3  ;;  %v683_v5 = vmax.f32 %v681_v51, %v682_v0  ;;  %v881_v32 = vand.u32 2147483647, %v787_v3  ;;  %v883_v35 = vand.u32 2147483648, %v787_v3 }
 0x24a   :  { %v2693_v42 = vpop.eup %1971  ;;  %v788_v7 = vsel %vm631_vm6, %v2691_v60, 0.0  ;;  %vm877_vm1 = vweird.f32 %v787_v3 }
 0x24b   :  { %v789_v10 = vsel %vm631_vm6, %v2693_v42, 0.0  ;;  %v684_v4 = vrot.slane %v683_v5, 1  ;;  %v884_v45 = vor.u32 1.1754944e-38, %v883_v35  ;;  %vm882_vm3 = vcmp.eq.f32.partialorder %v881_v32, 8.507059e+37 }
 0x24c   :  { %v790_v1 = vadd.f32 %v789_v10, %v788_v7 }
 0x24d   :  { %v685_v15 = vmax.f32 %v683_v5, %v684_v4 }
 0x24e   :  { %v791_v16 = vrot.slane %v790_v1, 4 }
 0x24f   :  { %v1974_v19 = vpop.eup %1973  ;;  %v714_v44 = vsub.f32 %v613_v26, %v685_v15  ;;  %v715_v17 = vsub.f32 %v616_v48, %v685_v15  ;;  %v622_v38 = vpop.f32.mrf.mxu1 }
 0x250   :  { %v792_v18 = vadd.f32 %v791_v16, %v790_v1  ;;  %v687_v2 = vsel %vm631_vm6, %v622_v38, -inf  ;;  %v873_v22 = vmul.f32 %v1974_v19, %v787_v3  ;;  %vm878_vm0 = vweird.f32 %v1974_v19 }
 0x251   :  { %v740_v25 = vmul.f32 1.442695, %v714_v44  ;;  %v742_v24 = vmul.f32 1.442695, %v715_v17  ;;  %v688_v52 = vmax.f32 %v686_v21, %v687_v2  ;;  %vm879_vm2 = vmor %vm877_vm1, %vm878_vm0  ;;  %vm1226_vm1 = vcmask 1041409  }
 0x252   :  { %v793_v34 = vrot.slane %v792_v18, 2  ;;  %v874_v29 = vsub.f32 1.0, %v873_v22 }
 0x253   :  { %1975 = vpow2.f32 %v740_v25  ;;  %v689_v46 = vrot.slane %v688_v52, 4 }
 0x254   :  { %v794_v36 = vadd.f32 %v793_v34, %v792_v18  ;;  %1977 = vpow2.f32 %v742_v24  ;;  %v875_v8 = vmul.f32 %v1974_v19, %v874_v29 }
 0x255   :  { %v690_v40 = vmax.f32 %v688_v52, %v689_v46 }
 0x256   :  { %v795_v9 = vrot.slane %v794_v36, 1  ;;  %v876_v43 = vadd.f32 %v1974_v19, %v875_v8 }
 0x257   :  { %v691_v39 = vrot.slane %v690_v40, 2 }
 0x258   :  { %v796_v23 = vadd.f32 %v795_v9, %v794_v36  ;;  %v880_v28 = vsel %vm879_vm2, %v1974_v19, %v876_v43  ;;  %vm1228_vm2 = vcmask 1042434  }
 0x259   :  { %v2701_v6 = vpop.eup %1975  ;;  %v692_v12 = vmax.f32 %v690_v40, %v691_v39  ;;  %v885_v26 = vsel %vm882_vm3, %v884_v45, %v880_v28 }
 0x25a   :  { %v2703_v47 = vpop.eup %1977  ;;  %1979 = vrcp.f32 %v796_v23  ;;  %v797_v50 = vsel %vm631_vm6, %v2701_v6, 0.0  ;;  %v886_v30 = vmul.f32 %v2681_v11, %v885_v26  ;;  %v887_v11 = vmul.f32 %v2683_v20, %v885_v26 }
 0x25b   :  { %v798_v33 = vsel %vm631_vm6, %v2703_v47, 0.0  ;;  %v693_v54 = vrot.slane %v692_v12, 1  ;;  %v899_v63 = vand.u32 2147483648, %v796_v23  ;;  %v897_v3 = vand.u32 2147483647, %v796_v23 }
 0x25c   :  { %v799_v55 = vadd.f32 %v798_v33, %v797_v50  ;;  %1887 = vmatmul.msk.f32.gmra.mxu2 %vm631_vm6, %v886_v30  ;;  %vm893_vm5 = vweird.f32 %v796_v23 }
 0x25d   :  { %v694_v49 = vmax.f32 %v692_v12, %v693_v54  ;;  %v900_v4 = vor.u32 1.1754944e-38, %v899_v63  ;;  %vm898_vm8 = vcmp.eq.f32.partialorder %v897_v3, 8.507059e+37 }
 0x25e   :  { %v800_v53 = vrot.slane %v799_v55, 4 }
 0x25f   :  { %v716_v57 = vsub.f32 %v619_v58, %v694_v49  ;;  %v717_v48 = vsub.f32 %v622_v38, %v694_v49  ;;  %v521_v58 = vpop.f32.mrf.mxu0 }
 0x260   :  { %v1980_v56 = vpop.eup %1979  ;;  %v801_v27 = vadd.f32 %v800_v53, %v799_v55 }
 0x261   :  { %v744_v59 = vmul.f32 1.442695, %v716_v57  ;;  %v746_v31 = vmul.f32 1.442695, %v717_v48  ;;  %v889_v37 = vmul.f32 %v1980_v56, %v796_v23  ;;  %vm894_vm4 = vweird.f32 %v1980_v56 }
 0x262   :  { %v802_v61 = vrot.slane %v801_v27, 2  ;;  %vm895_vm7 = vmor %vm893_vm5, %vm894_vm4 }
 0x263   :  { %1981 = vpow2.f32 %v744_v59  ;;  %v890_v41 = vsub.f32 1.0, %v889_v37 }
 0x264   :  { %v803_v62 = vadd.f32 %v802_v61, %v801_v27  ;;  %1983 = vpow2.f32 %v746_v31  ;;  %1888 = vmatmul.msk.f32.gmra.mxu2 %vm631_vm6, %v887_v11 }
 0x265   :  { %v891_v51 = vmul.f32 %v1980_v56, %v890_v41 }
 0x266   :  { %v804_v0 = vrot.slane %v803_v62, 1  ;;  %v1081_v5 = vpop.f32.mrf.mxu2 }
 0x267   :  { %v892_v7 = vadd.f32 %v1980_v56, %v891_v51  ;;  %v1129_v25 = vmul.f32 %v1081_v5, %v518_v14  ;;  %v524_v52 = vpop.f32.mrf.mxu0 }
 0x268   :  { %v805_v10 = vadd.f32 %v804_v0, %v803_v62 }
 0x269   :  { %v2713_v1 = vpop.eup %1981  ;;  %v896_v20 = vsel %vm895_vm7, %v1980_v56, %v892_v7 }
 0x26a   :  { %v2715_v15 = vpop.eup %1983  ;;  %1985 = vrcp.f32 %v805_v10  ;;  %v806_v16 = vsel %vm631_vm6, %v2713_v1, 0.0  ;;  %v901_v19 = vsel %vm898_vm8, %v900_v4, %v896_v20  ;;  %v915_v8 = vand.u32 2147483648, %v805_v10 }
 0x26b   :  { %v807_v44 = vsel %vm631_vm6, %v2715_v15, 0.0  ;;  %v902_v17 = vmul.f32 %v2691_v60, %v901_v19  ;;  %v903_v32 = vmul.f32 %v2693_v42, %v901_v19  ;;  %v913_v40 = vand.u32 2147483647, %v805_v10 }
 0x26c   :  { %v808_v38 = vadd.f32 %v807_v44, %v806_v16  ;;  %vm909_vm10 = vweird.f32 %v805_v10  ;;  %v916_v23 = vor.u32 1.1754944e-38, %v915_v8  ;;  %vm1230_vm8 = vcmask 1043459  }
 0x26d   :  { %1889 = vmatmul.msk.f32.gmra.mxu2 %vm631_vm6, %v902_v17  ;;  %vm914_vm12 = vcmp.eq.f32.partialorder %v913_v40, 8.507059e+37 }
 0x26e   :  { %v809_v18 = vrot.slane %v808_v38, 4  ;;  %v1084_v21 = vpop.f32.mrf.mxu2 }
 0x26f   :  { %v1130_v24 = vmul.f32 %v1084_v21, %v521_v58  ;;  %v527_v26 = vpop.f32.mrf.mxu0 }
 0x270   :  { %v1986_v2 = vpop.eup %1985  ;;  %v810_v22 = vadd.f32 %v809_v18, %v808_v38 }
 0x271   :  { %v905_v34 = vmul.f32 %v1986_v2, %v805_v10  ;;  %v1145_v46 = vadd.f32 %v1130_v24, %v1129_v25  ;;  %vm910_vm9 = vweird.f32 %v1986_v2 }
 0x272   :  { %v811_v29 = vrot.slane %v810_v22, 2  ;;  %vm911_vm11 = vmor %vm909_vm10, %vm910_vm9  ;;  %vm1234_vm9 = vcmask 1045509   ;;  %vm1236_vm10 = vcmask 1046534  }
 0x273   :  { %v906_v35 = vsub.f32 1.0, %v905_v34  ;;  %v1146_v12 = vrot.slane %v1145_v46, 4 }
 0x274   :  { %v812_v36 = vadd.f32 %v811_v29, %v810_v22 }
 0x275   :  { %1890 = vmatmul.msk.f32.gmra.mxu2 %vm631_vm6, %v903_v32  ;;  %v907_v60 = vmul.f32 %v1986_v2, %v906_v35  ;;  %v1147_v30 = vadd.f32 %v1146_v12, %v1145_v46 }
 0x276   :  { %v813_v9 = vrot.slane %v812_v36, 1  ;;  %v1087_v43 = vpop.f32.mrf.mxu2 }
 0x277   :  { %v908_v39 = vadd.f32 %v1986_v2, %v907_v60  ;;  %v1131_v55 = vmul.f32 %v1087_v43, %v524_v52  ;;  %v1148_v53 = vrot.slane %v1147_v30, 2  ;;  %v530_v31 = vpop.f32.mrf.mxu0 }
 0x278   :  { %v814_v45 = vadd.f32 %v813_v9, %v812_v36 }
 0x279   :  { %v912_v28 = vsel %vm911_vm11, %v1986_v2, %v908_v39  ;;  %v1149_v61 = vadd.f32 %v1148_v53, %v1147_v30  ;;  %vm1238_vm11 = vcmask 1047559  }
 0x27a   :  { %1987 = vrcp.f32 %v814_v45  ;;  %v917_v42 = vsel %vm914_vm12, %v916_v23, %v912_v28  ;;  %v931_v59 = vand.u32 2147483648, %v814_v45  ;;  %vm925_vm14 = vweird.f32 %v814_v45 }
 0x27b   :  { %v918_v50 = vmul.f32 %v2701_v6, %v917_v42  ;;  %v919_v48 = vmul.f32 %v2703_v47, %v917_v42  ;;  %v929_v6 = vand.u32 2147483647, %v814_v45  ;;  %v1150_v47 = vrot.slane %v1149_v61, 1 }
 0x27c   :  { %v932_v51 = vor.u32 1.1754944e-38, %v931_v59 }
 0x27d   :  { %1891 = vmatmul.msk.f32.gmra.mxu2 %vm631_vm6, %v918_v50  ;;  %vm930_vm0 = vcmp.eq.f32.partialorder %v929_v6, 8.507059e+37  ;;  %v1151_v10 = vadd.f32 %v1150_v47, %v1149_v61 }
 0x27e   :  { %v1090_v33 = vpop.f32.mrf.mxu2 }
 0x27f   :  { %v1132_v14 = vmul.f32 %v1090_v33, %v527_v26  ;;  %v533_v20 = vpop.f32.mrf.mxu0 }
 0x280   :  { %v1988_v54 = vpop.eup %1987 }
 0x281   :  { %v921_v49 = vmul.f32 %v1988_v54, %v814_v45  ;;  %v1152_v57 = vadd.f32 %v1132_v14, %v1131_v55  ;;  %vm926_vm13 = vweird.f32 %v1988_v54 }
 0x282   :  { %vm927_vm15 = vmor %vm925_vm14, %vm926_vm13 }
 0x283   :  { %v922_v56 = vsub.f32 1.0, %v921_v49  ;;  %v1153_v27 = vrot.slane %v1152_v57, 4 }
 0x285   :  { %1892 = vmatmul.msk.f32.gmra.mxu2 %vm631_vm6, %v919_v48  ;;  %v923_v37 = vmul.f32 %v1988_v54, %v922_v56  ;;  %v1154_v11 = vadd.f32 %v1153_v27, %v1152_v57 }
 0x286   :  { %v1093_v41 = vpop.f32.mrf.mxu2 }
 0x287   :  { %v924_v62 = vadd.f32 %v1988_v54, %v923_v37  ;;  %v1155_v63 = vrot.slane %v1154_v11, 2  ;;  %v1133_v44 = vmul.f32 %v1093_v41, %v530_v31  ;;  %v536_v27 = vpop.f32.mrf.mxu0 }
 0x289   :  { %v928_v3 = vsel %vm927_vm15, %v1988_v54, %v924_v62  ;;  %v1156_v0 = vadd.f32 %v1155_v63, %v1154_v11 }
 0x28a   :  { %v933_v58 = vsel %vm930_vm0, %v932_v51, %v928_v3 }
 0x28b   :  { %v934_v5 = vmul.f32 %v2713_v1, %v933_v58  ;;  %v1157_v7 = vrot.slane %v1156_v0, 1  ;;  %v935_v18 = vmul.f32 %v2715_v15, %v933_v58 }
 0x28d   :  { %1893 = vmatmul.msk.f32.gmra.mxu2 %vm631_vm6, %v934_v5  ;;  %v1158_v4 = vadd.f32 %v1157_v7, %v1156_v0 }
 0x28e   :  { %v1096_v16 = vpop.f32.mrf.mxu2 }
 0x28f   :  { %v1227_v19 = vsel %vm1226_vm1, %v1158_v4, %v1151_v10  ;;  %v1134_v17 = vmul.f32 %v1096_v16, %v533_v20  ;;  %v539_v51 = vpop.f32.mrf.mxu0 }
 0x291   :  { %v1159_v38 = vadd.f32 %v1134_v17, %v1133_v44  ;;  %v1216_v44 = vld [vmem:[#allocation5 + $0x3d0] sm:$0xff] }
 0x292   :  { %v1215_v17 = vld [vmem:[#allocation5 + $0x390] sm:$0xff]  ;;  %1241 = vmatpush.msra.mxu3 %v1216_v44 }
 0x293   :  { %v1160_v21 = vrot.slane %v1159_v38, 4 }
 0x294   :  { %1242 = vmatpush.msra.mxu3 %v1215_v17 }
 0x295   :  { %1894 = vmatmul.msk.f32.gmra.mxu2 %vm631_vm6, %v935_v18  ;;  %v1161_v2 = vadd.f32 %v1160_v21, %v1159_v38  ;;  %v1214_v38 = vld [vmem:[#allocation5 + $0x350] sm:$0xff] }
 0x296   :  { %1243 = vmatpush.msra.mxu3 %v1214_v38 }
 0x297   :  { %v1162_v22 = vrot.slane %v1161_v2, 2  ;;  %v542_v21 = vpop.f32.mrf.mxu0 }
 0x299   :  { %v1163_v1 = vadd.f32 %v1162_v22, %v1161_v2 }
 0x29b   :  { %v1164_v25 = vrot.slane %v1163_v1, 1 }
 0x29d   :  { %v1165_v24 = vadd.f32 %v1164_v25, %v1163_v1 }
 0x29f   :  { %v1229_v34 = vsel %vm1228_vm2, %v1165_v24, %v1227_v19  ;;  %v545_v22 = vpop.f32.mrf.mxu0 }
 0x2a0   :  { %v625_v52 = vpop.f32.mrf.mxu1 }
 0x2a1   :  { %v695_v46 = vsel %vm631_vm6, %v625_v52, -inf }
 0x2a7   :  { %v548_v25 = vpop.f32.mrf.mxu0 }
 0x2a9   :  { %v628_v29 = vpop.f32.mrf.mxu1 }
 0x2aa   :  { %v696_v32 = vsel %vm631_vm6, %v628_v29, -inf }
 0x2ab   :  { %v697_v35 = vmax.f32 %v695_v46, %v696_v32  ;;  %v1211_v32 = vld [vmem:[#allocation5 + $0x290] sm:$0xff] }
 0x2ad   :  { %v698_v36 = vrot.slane %v697_v35, 4 }
 0x2af   :  { %v699_v8 = vmax.f32 %v697_v35, %v698_v36  ;;  %v551_v46 = vpop.f32.mrf.mxu0  ;;  %v1209_v36 = vld [vmem:[#allocation5 + $0x210] sm:$0xff] }
 0x2b1   :  { %v700_v15 = vrot.slane %v699_v8, 2 }
 0x2b3   :  { %v701_v60 = vmax.f32 %v699_v8, %v700_v15  ;;  %v1208_v15 = vld [vmem:[#allocation5 + $0x1d0] sm:$0xff] }
 0x2b5   :  { %v702_v40 = vrot.slane %v701_v60, 1 }
 0x2b7   :  { %v703_v9 = vmax.f32 %v701_v60, %v702_v40  ;;  %v554_v8 = vpop.f32.mrf.mxu0  ;;  %v1207_v60 = vld [vmem:[#allocation5 + $0x190] sm:$0xff] }
 0x2b8   :  { %v1206_v40 = vld [vmem:[#allocation5 + $0x150] sm:$0xff] }
 0x2b9   :  { %v718_v43 = vsub.f32 %v625_v52, %v703_v9  ;;  %v719_v39 = vsub.f32 %v628_v29, %v703_v9  ;;  %v1213_v52 = vld [vmem:[#allocation5 + $0x310] sm:$0xff] }
 0x2ba   :  { %v1212_v29 = vld [vmem:[#allocation5 + $0x2d0] sm:$0xff]  ;;  %1244 = vmatpush.msra.mxu3 %v1213_v52 }
 0x2bb   :  { %v748_v45 = vmul.f32 1.442695, %v718_v43  ;;  %v750_v23 = vmul.f32 1.442695, %v719_v39  ;;  %v1205_v9 = vld [vmem:[#allocation5 + $0x110] sm:$0xff] }
 0x2bc   :  { %1245 = vmatpush.msra.mxu3 %v1212_v29  ;;  %v1204_v43 = vld [vmem:[#allocation5 + $0xd0] sm:$0xff] }
 0x2bd   :  { %1989 = vpow2.f32 %v748_v45  ;;  %v1203_v45 = vld [vmem:[#allocation5 + $0x90] sm:$0xff] }
 0x2be   :  { %1991 = vpow2.f32 %v750_v23  ;;  %1246 = vmatpush.msra.mxu3 %v1211_v32  ;;  %v2742_v52 = vld [vmem:[#allocation2] sm:$0xff] }
 0x2bf   :  { %v557_v23 = vpop.f32.mrf.mxu0  ;;  %v1217_v29 = vperm.slane %v2742_v52, 3 }
 0x2c3   :  { %v1990_v28 = vpop.eup %1989 }
 0x2c4   :  { %v1992_v12 = vpop.eup %1991  ;;  %v815_v42 = vsel %vm631_vm6, %v1990_v28, 0.0 }
 0x2c5   :  { %v816_v26 = vsel %vm631_vm6, %v1992_v12, 0.0 }
 0x2c6   :  { %v817_v50 = vadd.f32 %v816_v26, %v815_v42  ;;  %v1202_v42 = vld [vmem:[#allocation5 + $0x50] sm:$0xff] }
 0x2c8   :  { %v818_v30 = vrot.slane %v817_v50, 4 }
 0x2ca   :  { %v819_v33 = vadd.f32 %v818_v30, %v817_v50 }
 0x2cc   :  { %v820_v54 = vrot.slane %v819_v33, 2 }
 0x2ce   :  { %v821_v55 = vadd.f32 %v820_v54, %v819_v33  ;;  %v1201_v33 = vld [vmem:[#allocation5 + $0x10] sm:$0xff] }
 0x2d0   :  { %v822_v14 = vrot.slane %v821_v55, 1 }
 0x2d2   :  { %v823_v49 = vadd.f32 %v822_v14, %v821_v55 }
 0x2d4   :  { %1993 = vrcp.f32 %v823_v49  ;;  %v947_v56 = vand.u32 2147483648, %v823_v49  ;;  %v945_v37 = vand.u32 2147483647, %v823_v49  ;;  %vm941_vm4 = vweird.f32 %v823_v49 }
 0x2d6   :  { %v948_v11 = vor.u32 1.1754944e-38, %v947_v56  ;;  %vm946_vm7 = vcmp.eq.f32.partialorder %v945_v37, 8.507059e+37 }
 0x2da   :  { %v1994_v53 = vpop.eup %1993 }
 0x2db   :  { %v937_v57 = vmul.f32 %v1994_v53, %v823_v49  ;;  %vm942_vm3 = vweird.f32 %v1994_v53 }
 0x2dc   :  { %vm943_vm5 = vmor %vm941_vm4, %vm942_vm3 }
 0x2dd   :  { %v938_v48 = vsub.f32 1.0, %v937_v57 }
 0x2df   :  { %v1099_v59 = vpop.f32.mrf.mxu2  ;;  %v939_v31 = vmul.f32 %v1994_v53, %v938_v48 }
 0x2e0   :  { %v1135_v6 = vmul.f32 %v1099_v59, %v536_v27 }
 0x2e1   :  { %v940_v61 = vadd.f32 %v1994_v53, %v939_v31 }
 0x2e3   :  { %v944_v41 = vsel %vm943_vm5, %v1994_v53, %v940_v61  ;;  %v560_v53 = vpop.f32.mrf.mxu0 }
 0x2e4   :  { %v949_v62 = vsel %vm946_vm7, %v948_v11, %v944_v41 }
 0x2e5   :  { %v950_v63 = vmul.f32 %v1990_v28, %v949_v62  ;;  %v951_v5 = vmul.f32 %v1992_v12, %v949_v62 }
 0x2e7   :  { %1895 = vmatmul.msk.f32.gmra.mxu2 %vm631_vm6, %v950_v63  ;;  %v1102_v3 = vpop.f32.mrf.mxu2 }
 0x2e8   :  { %v1136_v47 = vmul.f32 %v1102_v3, %v539_v51 }
 0x2ea   :  { %v1166_v0 = vadd.f32 %v1136_v47, %v1135_v6 }
 0x2eb   :  { %v563_v11 = vpop.f32.mrf.mxu0 }
 0x2ec   :  { %v1167_v58 = vrot.slane %v1166_v0, 4 }
 0x2ee   :  { %v1168_v7 = vadd.f32 %v1167_v58, %v1166_v0 }
 0x2ef   :  { %1896 = vmatmul.msk.f32.gmra.mxu2 %vm631_vm6, %v951_v5  ;;  %vm1232_vm6 = vcmask 1044484  }
 0x2f0   :  { %v1169_v10 = vrot.slane %v1168_v7, 2  ;;  %v1105_v18 = vpop.f32.mrf.mxu2 }
 0x2f1   :  { %v1137_v26 = vmul.f32 %v1105_v18, %v542_v21 }
 0x2f2   :  { %v1170_v4 = vadd.f32 %v1169_v10, %v1168_v7 }
 0x2f4   :  { %v1171_v20 = vrot.slane %v1170_v4, 1 }
 0x2f6   :  { %v1172_v16 = vadd.f32 %v1171_v20, %v1170_v4 }
 0x2f8   :  { %v2739_v19 = vsel %vm1230_vm8, %v1172_v16, %v1229_v34  ;;  %v1108_v2 = vpop.f32.mrf.mxu2  ;;  %v1210_v34 = vld [vmem:[#allocation5 + $0x250] sm:$0xff] }
 0x2f9   :  { %1247 = vmatpush.msra.mxu3 %v1210_v34  ;;  %v1138_v28 = vmul.f32 %v1108_v2, %v545_v22 }
 0x2fb   :  { %1248 = vmatpush.msra.mxu3 %v1209_v36  ;;  %v1173_v54 = vadd.f32 %v1138_v28, %v1137_v26  ;;  %v1350_v36 = vld [vmem:[#allocation5 + $0x3f0] sm:$0xff]  ;;  %v1327_v28 = vld [vmem:[#allocation5 + $0x298] sm:$0xff] }
 0x2fc   :  { %1421 = vmatpush.msrb.mxu0 %v1350_v36  ;;  %v1322_v26 = vld [vmem:[#allocation5 + $0x230] sm:$0xff]  ;;  %v1283_v36 = vperm.slane %v2742_v52, 4 }
 0x2fd   :  { %1249 = vmatpush.msra.mxu3 %v1208_v15  ;;  %v1174_v57 = vrot.slane %v1173_v54, 4  ;;  %v1343_v15 = vld [vmem:[#allocation5 + $0x398] sm:$0xff] }
 0x2ff   :  { %1250 = vmatpush.msra.mxu3 %v1207_v60  ;;  %v1175_v59 = vadd.f32 %v1174_v57, %v1173_v54  ;;  %v1342_v60 = vld [vmem:[#allocation5 + $0x370] sm:$0xff]  ;;  %v1307_v54 = vld [vmem:[#allocation5 + $0x158] sm:$0xff] }
 0x300   :  { %v1111_v1 = vpop.f32.mrf.mxu2 }
 0x301   :  { %1251 = vmatpush.msra.mxu3 %v1206_v40  ;;  %v1139_v30 = vmul.f32 %v1111_v1, %v548_v25  ;;  %v1176_v6 = vrot.slane %v1175_v59, 2  ;;  %v1339_v40 = vld [vmem:[#allocation5 + $0x358] sm:$0xff] }
 0x303   :  { %1252 = vmatpush.msra.mxu3 %v1205_v9  ;;  %v1177_v3 = vadd.f32 %v1176_v6, %v1175_v59  ;;  %v1338_v9 = vld [vmem:[#allocation5 + $0x330] sm:$0xff]  ;;  %v1340_v6 = vld [vmem:[#allocation5 + $0x360] sm:$0xff] }
 0x305   :  { %1253 = vmatpush.msra.mxu3 %v1204_v43  ;;  %v1178_v7 = vrot.slane %v1177_v3, 1  ;;  %v1335_v43 = vld [vmem:[#allocation5 + $0x318] sm:$0xff] }
 0x307   :  { %1254 = vmatpush.msra.mxu3 %v1203_v45  ;;  %v1179_v44 = vadd.f32 %v1178_v7, %v1177_v3  ;;  %v1331_v45 = vld [vmem:[#allocation5 + $0x2d8] sm:$0xff]  ;;  %v1316_v3 = vld [vmem:[#allocation5 + $0x1e0] sm:$0xff] }
 0x308   :  { %v1114_v24 = vpop.f32.mrf.mxu2  ;;  %v1304_v7 = vld [vmem:[#allocation5 + $0x120] sm:$0xff] }
 0x309   :  { %v1140_v12 = vmul.f32 %v1114_v24, %v551_v46  ;;  %1255 = vmatpush.msra.mxu3 %v1202_v42  ;;  %v1233_v2 = vsel %vm1232_vm6, %v1179_v44, %v2739_v19  ;;  %v1261_v46 = vperm.slane %v2742_v52, 0  ;;  %v1346_v19 = vld [vmem:[#allocation5 + $0x3b0] sm:$0xff]  ;;  %v1323_v42 = vld [vmem:[#allocation5 + $0x258] sm:$0xff] }
 0x30a   :  { %1422 = vmatpush.msrb.mxu0 %v1346_v19  ;;  %v1298_v44 = vld [vmem:[#allocation5 + $0xb0] sm:$0xff] }
 0x30b   :  { %v1180_v14 = vadd.f32 %v1140_v12, %v1139_v30  ;;  %1256 = vmatpush.msra.mxu3 %v1201_v33  ;;  %v1326_v12 = vld [vmem:[#allocation5 + $0x270] sm:$0xff]  ;;  %v1315_v30 = vld [vmem:[#allocation5 + $0x1d8] sm:$0xff] }
 0x30c   :  { %1423 = vmatpush.msrb.mxu0 %v1342_v60  ;;  %v1311_v33 = vld [vmem:[#allocation5 + $0x198] sm:$0xff] }
 0x30d   :  { %v1181_v48 = vrot.slane %v1180_v14, 4 }
 0x30e   :  { %1424 = vmatpush.msrb.mxu0 %v1338_v9  ;;  %v1345_v9 = vld [vmem:[#allocation5 + $0x3a8] sm:$0xff] }
 0x30f   :  { %v1182_v31 = vadd.f32 %v1181_v48, %v1180_v14  ;;  %v1299_v14 = vld [vmem:[#allocation5 + $0xd8] sm:$0xff] }
 0x310   :  { %v1117_v35 = vpop.f32.mrf.mxu2  ;;  %v1291_v48 = vld [vmem:[#allocation5 + $0x58] sm:$0xff] }
 0x311   :  { %v1141_v55 = vmul.f32 %v1117_v35, %v554_v8  ;;  %v1183_v61 = vrot.slane %v1182_v31, 2  ;;  %v1347_v8 = vld [vmem:[#allocation5 + $0x3d8] sm:$0xff] }
 0x312   :  { %1361 = vmatpush.msrb.mxu3 %v1347_v8 }
 0x313   :  { %v1184_v47 = vadd.f32 %v1183_v61, %v1182_v31  ;;  %v1348_v31 = vld [vmem:[#allocation5 + $0x3e0] sm:$0xff] }
 0x314   :  { %1362 = vmatpush.msrb.mxu3 %v1343_v15  ;;  %v1336_v61 = vld [vmem:[#allocation5 + $0x320] sm:$0xff]  ;;  %v1285_v15 = vperm.slane %v2742_v52, 5  ;;  %v1635_v52 = vld [vmem:[#allocation7 + $0x58] sm:$0xff] }
 0x315   :  { %v1185_v10 = vrot.slane %v1184_v47, 1 }
 0x316   :  { %1363 = vmatpush.msrb.mxu3 %v1339_v40  ;;  %v1349_v40 = vld [vmem:[#allocation5 + $0x3e8] sm:$0xff] }
 0x317   :  { %v1186_v17 = vadd.f32 %v1185_v10, %v1184_v47  ;;  %v1314_v47 = vld [vmem:[#allocation5 + $0x1b0] sm:$0xff] }
 0x318   :  { %v1120_v39 = vpop.f32.mrf.mxu2  ;;  %1364 = vmatpush.msrb.mxu3 %v1335_v43  ;;  %v1306_v10 = vld [vmem:[#allocation5 + $0x130] sm:$0xff]  ;;  %v1639_v43 = vld [vmem:[#allocation7 + $0x78] sm:$0xff] }
 0x319   :  { %v1142_v50 = vmul.f32 %v1120_v39, %v557_v23  ;;  %v1235_v1 = vsel %vm1234_vm9, %v1186_v17, %v1233_v2  ;;  %v1334_v39 = vld [vmem:[#allocation5 + $0x2f0] sm:$0xff]  ;;  %v1292_v17 = vld [vmem:[#allocation5 + $0x60] sm:$0xff]  ;;  %1689 = vmatpush.msrb.mxu1 %v1639_v43 }
 0x31a   :  { %v1330_v23 = vld [vmem:[#allocation5 + $0x2b0] sm:$0xff]  ;;  %1425 = vmatpush.msrb.mxu0 %v1334_v39  ;;  %1365 = vmatpush.msrb.mxu3 %v1331_v45  ;;  %v1341_v45 = vld [vmem:[#allocation5 + $0x368] sm:$0xff]  ;;  %v1684_v43 = vld [vmem:[#allocation7 + $0x1e0] sm:$0xff] }
 0x31b   :  { %v1187_v49 = vadd.f32 %v1142_v50, %v1141_v55  ;;  %v1319_v50 = vld [vmem:[#allocation5 + $0x218] sm:$0xff]  ;;  %v1638_v39 = vld [vmem:[#allocation7 + $0x70] sm:$0xff] }
 0x31c   :  { %1426 = vmatpush.msrb.mxu0 %v1330_v23  ;;  %1366 = vmatpush.msrb.mxu3 %v1327_v28  ;;  %v1303_v55 = vld [vmem:[#allocation5 + $0x118] sm:$0xff]  ;;  %v1637_v23 = vld [vmem:[#allocation7 + $0x68] sm:$0xff] }
 0x31d   :  { %v1188_v56 = vrot.slane %v1187_v49, 4  ;;  %1690 = vmatpush.msrb.mxu1 %v1638_v39  ;;  %v1337_v28 = vld [vmem:[#allocation5 + $0x328] sm:$0xff] }
 0x31e   :  { %1427 = vmatpush.msrb.mxu0 %v1326_v12  ;;  %1367 = vmatpush.msrb.mxu3 %v1323_v42  ;;  %v1636_v12 = vld [vmem:[#allocation7 + $0x60] sm:$0xff]  ;;  %v1333_v42 = vld [vmem:[#allocation5 + $0x2e8] sm:$0xff] }
 0x31f   :  { %v1189_v37 = vadd.f32 %v1188_v56, %v1187_v49  ;;  %1691 = vmatpush.msrb.mxu1 %v1637_v23 }
 0x320   :  { %1428 = vmatpush.msrb.mxu0 %v1322_v26  ;;  %1368 = vmatpush.msrb.mxu3 %v1319_v50  ;;  %v1329_v26 = vld [vmem:[#allocation5 + $0x2a8] sm:$0xff]  ;;  %v1634_v50 = vld [vmem:[#allocation7 + $0x50] sm:$0xff] }
 0x321   :  { %v1190_v41 = vrot.slane %v1189_v37, 2  ;;  %1692 = vmatpush.msrb.mxu1 %v1636_v12 }
 0x322   :  { %1369 = vmatpush.msrb.mxu3 %v1315_v30  ;;  %v1325_v30 = vld [vmem:[#allocation5 + $0x268] sm:$0xff] }
 0x323   :  { %v1191_v58 = vadd.f32 %v1190_v41, %v1189_v37  ;;  %v1344_v37 = vld [vmem:[#allocation5 + $0x3a0] sm:$0xff]  ;;  %1693 = vmatpush.msrb.mxu1 %v1635_v52  ;;  %v1683_v52 = vld [vmem:[#allocation7 + $0x1d8] sm:$0xff] }
 0x324   :  { %1370 = vmatpush.msrb.mxu3 %v1311_v33  ;;  %v1328_v41 = vld [vmem:[#allocation5 + $0x2a0] sm:$0xff]  ;;  %v1321_v33 = vld [vmem:[#allocation5 + $0x228] sm:$0xff] }
 0x325   :  { %v1192_v20 = vrot.slane %v1191_v58, 1  ;;  %1694 = vmatpush.msrb.mxu1 %v1634_v50 }
 0x326   :  { %1371 = vmatpush.msrb.mxu3 %v1307_v54  ;;  %v1317_v54 = vld [vmem:[#allocation5 + $0x1e8] sm:$0xff] }
 0x327   :  { %v1193_v18 = vadd.f32 %v1192_v20, %v1191_v58  ;;  %v1308_v58 = vld [vmem:[#allocation5 + $0x160] sm:$0xff]  ;;  %v1302_v20 = vld [vmem:[#allocation5 + $0xf0] sm:$0xff] }
 0x328   :  { %1372 = vmatpush.msrb.mxu3 %v1303_v55  ;;  %v1313_v55 = vld [vmem:[#allocation5 + $0x1a8] sm:$0xff] }
 0x329   :  { %v1237_v25 = vsel %vm1236_vm10, %v1193_v18, %v1235_v1  ;;  %v1288_v18 = vld [vmem:[#allocation5 + $0x20] sm:$0xff] }
 0x32a   :  { %1373 = vmatpush.msrb.mxu3 %v1299_v14  ;;  %v1309_v14 = vld [vmem:[#allocation5 + $0x168] sm:$0xff] }
 0x36a   :  { %v1123_v27 = vpop.f32.mrf.mxu2 }
 0x36b   :  { %v1143_v63 = vmul.f32 %v1123_v27, %v560_v53  ;;  %v1295_v53 = vld [vmem:[#allocation5 + $0x98] sm:$0xff] }
 0x36c   :  { %1374 = vmatpush.msrb.mxu3 %v1295_v53  ;;  %v1287_v27 = vld [vmem:[#allocation5 + $0x18] sm:$0xff]  ;;  %v1301_v53 = vld [vmem:[#allocation5 + $0xe8] sm:$0xff] }
 0x36e   :  { %1375 = vmatpush.msrb.mxu3 %v1291_v48  ;;  %v1293_v48 = vld [vmem:[#allocation5 + $0x68] sm:$0xff] }
 0x370   :  { %1376 = vmatpush.msrb.mxu3 %v1287_v27  ;;  %v2146_v27 = vmov 1.4142135  }
 0x372   :  { %v1126_v62 = vpop.f32.mrf.mxu2 }
 0x373   :  { %v1144_v51 = vmul.f32 %v1126_v62, %v563_v11  ;;  %v1332_v11 = vld [vmem:[#allocation5 + $0x2e0] sm:$0xff] }
 0x374   :  { %v1324_v62 = vld [vmem:[#allocation5 + $0x260] sm:$0xff] }
 0x375   :  { %v1194_v0 = vadd.f32 %v1144_v51, %v1143_v63  ;;  %v1320_v63 = vld [vmem:[#allocation5 + $0x220] sm:$0xff]  ;;  %v1318_v51 = vld [vmem:[#allocation5 + $0x1f0] sm:$0xff] }
 0x376   :  { %1429 = vmatpush.msrb.mxu0 %v1318_v51 }
 0x377   :  { %v1195_v5 = vrot.slane %v1194_v0, 4 }
 0x378   :  { %1430 = vmatpush.msrb.mxu0 %v1314_v47  ;;  %v1629_v47 = vld [vmem:[#allocation7 + $0x28] sm:$0xff] }
 0x379   :  { %v1196_v4 = vadd.f32 %v1195_v5, %v1194_v0  ;;  %v1312_v0 = vld [vmem:[#allocation5 + $0x1a0] sm:$0xff]  ;;  %v1310_v5 = vld [vmem:[#allocation5 + $0x170] sm:$0xff] }
 0x37a   :  { %1431 = vmatpush.msrb.mxu0 %v1310_v5 }
 0x37b   :  { %v1197_v16 = vrot.slane %v1196_v4, 2 }
 0x37c   :  { %1432 = vmatpush.msrb.mxu0 %v1306_v10  ;;  %v1627_v10 = vld [vmem:[#allocation7 + $0x18] sm:$0xff] }
 0x37d   :  { %v1198_v38 = vadd.f32 %v1197_v16, %v1196_v4  ;;  %v1300_v4 = vld [vmem:[#allocation5 + $0xe0] sm:$0xff] }
 0x37e   :  { %v1296_v16 = vld [vmem:[#allocation5 + $0xa0] sm:$0xff]  ;;  %1433 = vmatpush.msrb.mxu0 %v1302_v20 }
 0x37f   :  { %v1199_v21 = vrot.slane %v1198_v38, 1 }
 0x380   :  { %1434 = vmatpush.msrb.mxu0 %v1298_v44 }
 0x381   :  { %v1200_v22 = vadd.f32 %v1199_v21, %v1198_v38  ;;  %v1294_v38 = vld [vmem:[#allocation5 + $0x70] sm:$0xff] }
 0x382   :  { %v1290_v21 = vld [vmem:[#allocation5 + $0x30] sm:$0xff]  ;;  %1435 = vmatpush.msrb.mxu0 %v1294_v38 }
 0x383   :  { %v1239_v24 = vsel %vm1238_vm11, %v1200_v22, %v1237_v25 }
 0x384   :  { %1257 = vmatmul.f32.vlgmr.msra.gmra.mxu3 %v1239_v24  ;;  %1436 = vmatpush.msrb.mxu0 %v1290_v21 }
 0x385   :  { %1381 = vmatpush.msra.mxu3 %v1348_v31 }
 0x387   :  { %1382 = vmatpush.msra.mxu3 %v1344_v37 }
 0x389   :  { %1383 = vmatpush.msra.mxu3 %v1340_v6  ;;  %v1633_v6 = vld [vmem:[#allocation7 + $0x48] sm:$0xff] }
 0x38a   :  { %1695 = vmatpush.msrb.mxu1 %v1633_v6 }
 0x38b   :  { %1384 = vmatpush.msra.mxu3 %v1336_v61  ;;  %v1632_v61 = vld [vmem:[#allocation7 + $0x40] sm:$0xff] }
 0x38c   :  { %1696 = vmatpush.msrb.mxu1 %v1632_v61  ;;  %v1648_v61 = vld [vmem:[#allocation7 + $0xc0] sm:$0xff] }
 0x38d   :  { %1385 = vmatpush.msra.mxu3 %v1332_v11 }
 0x38f   :  { %1386 = vmatpush.msra.mxu3 %v1328_v41  ;;  %v1631_v41 = vld [vmem:[#allocation7 + $0x38] sm:$0xff] }
 0x390   :  { %1697 = vmatpush.msrb.mxu1 %v1631_v41 }
 0x391   :  { %1387 = vmatpush.msra.mxu3 %v1324_v62  ;;  %v2762_v62 = vld [vmem:[%s2903_s2] sm:$0xf]  ;;  %s2147_s2 = smov [#allocation10]  }
 0x392   :  { %v1353_v20 = vperm.slane %v2762_v62, 0  ;;  %s1851_s30 = sshll.u32 %s2147_s2, 4  ;;  %s1852_s30 = int_to_ptr.vmem [resolvable:$true] %s1851_s30 }
 0x393   :  { %1388 = vmatpush.msra.mxu3 %v1320_v63  ;;  %v1630_v63 = vld [vmem:[#allocation7 + $0x30] sm:$0xff] }
 0x394   :  { %1698 = vmatpush.msrb.mxu1 %v1630_v63 }
 0x395   :  { %1389 = vmatpush.msra.mxu3 %v1316_v3  ;;  %v1356_v3 = vperm.slane %v2762_v62, 3 }
 0x396   :  { %1699 = vmatpush.msrb.mxu1 %v1629_v47 }
 0x397   :  { %1390 = vmatpush.msra.mxu3 %v1312_v0  ;;  %v1628_v0 = vld [vmem:[#allocation7 + $0x20] sm:$0xff] }
 0x398   :  { %1700 = vmatpush.msrb.mxu1 %v1628_v0  ;;  %v1647_v0 = vld [vmem:[#allocation7 + $0xb8] sm:$0xff] }
 0x399   :  { %1391 = vmatpush.msra.mxu3 %v1308_v58 }
 0x39a   :  { %1701 = vmatpush.msrb.mxu1 %v1627_v10 }
 0x39b   :  { %1392 = vmatpush.msra.mxu3 %v1304_v7 }
 0x39d   :  { %1393 = vmatpush.msra.mxu3 %v1300_v4 }
 0x39f   :  { %1394 = vmatpush.msra.mxu3 %v1296_v16  ;;  %v1626_v16 = vld [vmem:[#allocation7 + $0x10] sm:$0xff] }
 0x3a0   :  { %1702 = vmatpush.msrb.mxu1 %v1626_v16 }
 0x3a1   :  { %1395 = vmatpush.msra.mxu3 %v1292_v17  ;;  %v1625_v17 = vld [vmem:[#allocation7 + $0x8] sm:$0xff] }
 0x3a2   :  { %1703 = vmatpush.msrb.mxu1 %v1625_v17 }
 0x3a3   :  { %1396 = vmatpush.msra.mxu3 %v1288_v18 }
 0x407   :  { %v1258_v32 = vpop.f32.mrf.mxu3 }
 0x408   :  { %v1259_v34 = vadd.f32 %v1258_v32, %v1217_v29 }
 0x40a   :  { %v2746_v35 = vadd.f32 %v1261_v46, %v1259_v34 }
 0x40c   :  { %1263 = vadd.xlane.f32.xlu2 %v2746_v35 }
 0x47f   :  { %v1264_v49 = vpop.xlane.xlu2 %1263 }
 0x480   :  { %v1265_v57 = vmul.f32 %v1264_v49, %v2221_v13  ;;  %v1305_v49 = vld [vmem:[#allocation5 + $0x128] sm:$0xff] }
 0x482   :  { %v2751_v56 = vsub.f32 %v2746_v35, %v1265_v57  ;;  %v1297_v57 = vld [vmem:[#allocation5 + $0xa8] sm:$0xff] }
 0x484   :  { %v1267_v59 = vmul.f32 %v2751_v56, %v2751_v56 }
 0x486   :  { %1268 = vadd.xlane.f32.xlu0 %v1267_v59 }
 0x4f9   :  { %v1269_v2 = vpop.xlane.xlu0 %1268 }
 0x4fa   :  { %v1270_v22 = vmul.f32 %v1269_v2, %v2221_v13  ;;  %v1624_v2 = vld [vmem:[#allocation7] sm:$0xff] }
 0x4fb   :  { %1704 = vmatpush.msrb.mxu1 %v1624_v2 }
 0x4fc   :  { %v1271_v1 = vadd.f32 1e-05, %v1270_v22  ;;  %v1655_v22 = vld [vmem:[#allocation7 + $0xf8] sm:$0xff] }
 0x4fe   :  { %1995 = vrsqrt.f32 %v1271_v1  ;;  %vm1278_vm13 = vweird.f32 %v1271_v1 }
 0x4ff   :  { %1997 = vrcp.f32 %v2146_v27  ;;  %v1681_v27 = vld [vmem:[#allocation7 + $0x1c8] sm:$0xff] }
 0x504   :  { %v1996_v25 = vpop.eup %1995 }
 0x505   :  { %v1273_v24 = vmul.f32 %v1996_v25, %v1271_v1  ;;  %vm1279_vm12 = vweird.f32 %v1996_v25  ;;  %v1998_v59 = vpop.eup %1997  ;;  %v1687_v1 = vld [vmem:[#allocation7 + $0x1f8] sm:$0xff] }
 0x506   :  { %vm1280_vm14 = vmor %vm1278_vm13, %vm1279_vm12  ;;  %v1446_v31 = vmul.f32 1.4142135, %v1998_v59  ;;  %vm1450_vm15 = vweird.f32 %v1998_v59  ;;  %1749 = vmatpush.msra.mxu1 %v1687_v1  ;;  %v1678_v1 = vld [vmem:[#allocation7 + $0x1b0] sm:$0xff] }
 0x507   :  { %v1274_v29 = vmul.f32 %v1996_v25, %v1273_v24 }
 0x508   :  { %v1447_v37 = vsub.f32 1.0, %v1446_v31 }
 0x509   :  { %v1275_v46 = vmul.f32 0.5, %v1274_v29  ;;  %v1654_v29 = vld [vmem:[#allocation7 + $0xf0] sm:$0xff] }
 0x50a   :  { %v1448_v11 = vmul.f32 %v1998_v59, %v1447_v37 }
 0x50b   :  { %v1276_v32 = vsub.f32 1.5, %v1275_v46  ;;  %v1686_v46 = vld [vmem:[#allocation7 + $0x1f0] sm:$0xff] }
 0x50c   :  { %v1449_v51 = vadd.f32 %v1998_v59, %v1448_v11  ;;  %1750 = vmatpush.msra.mxu1 %v1686_v46  ;;  %v1680_v11 = vld [vmem:[#allocation7 + $0x1c0] sm:$0xff] }
 0x50d   :  { %v1277_v34 = vmul.f32 %v1996_v25, %v1276_v32 }
 0x50e   :  { %v2765_v5 = vsel %vm1450_vm15, %v1998_v59, %v1449_v51 }
 0x50f   :  { %v1281_v19 = vsel %vm1280_vm14, %v1996_v25, %v1277_v34 }
 0x510   :  { %v1282_v8 = vmul.f32 %v1281_v19, %v2751_v56  ;;  %v1289_v56 = vld [vmem:[#allocation5 + $0x28] sm:$0xff]  ;;  %v1354_v19 = vperm.slane %v2762_v62, 1 }
 0x512   :  { %v1284_v60 = vmul.f32 %v1283_v36, %v1282_v8  ;;  %v1653_v8 = vld [vmem:[#allocation7 + $0xe8] sm:$0xff] }
 0x514   :  { %v1286_v13 = vadd.f32 %v1285_v15, %v1284_v60  ;;  %v1685_v15 = vld [vmem:[#allocation7 + $0x1e8] sm:$0xff] }
 0x515   :  { %1751 = vmatpush.msra.mxu1 %v1685_v15 }
 0x516   :  { %1377 = vmatmul.f32.vlgmr.msrb.gmra.mxu3 %v1286_v13  ;;  %1437 = vmatmul.f32.vlgmr.msrb.gmra.mxu0 %v1286_v13 }
 0x517   :  { %1401 = vmatpush.msrb.mxu3 %v1349_v40  ;;  %1752 = vmatpush.msra.mxu1 %v1684_v43 }
 0x519   :  { %1402 = vmatpush.msrb.mxu3 %v1345_v9  ;;  %v1652_v9 = vld [vmem:[#allocation7 + $0xe0] sm:$0xff]  ;;  %1753 = vmatpush.msra.mxu1 %v1683_v52 }
 0x51b   :  { %1403 = vmatpush.msrb.mxu3 %v1341_v45 }
 0x51d   :  { %1404 = vmatpush.msrb.mxu3 %v1337_v28 }
 0x51e   :  { %1397 = vmatmul.f32.vlgmr.msra.gmra.mxu3 %v1286_v13 }
 0x51f   :  { %1405 = vmatpush.msrb.mxu3 %v1333_v42  ;;  %v1651_v42 = vld [vmem:[#allocation7 + $0xd8] sm:$0xff] }
 0x521   :  { %1406 = vmatpush.msrb.mxu3 %v1329_v26 }
 0x523   :  { %1407 = vmatpush.msrb.mxu3 %v1325_v30 }
 0x525   :  { %1408 = vmatpush.msrb.mxu3 %v1321_v33 }
 0x527   :  { %1409 = vmatpush.msrb.mxu3 %v1317_v54  ;;  %v1650_v54 = vld [vmem:[#allocation7 + $0xd0] sm:$0xff] }
 0x529   :  { %1410 = vmatpush.msrb.mxu3 %v1313_v55  ;;  %v1682_v55 = vld [vmem:[#allocation7 + $0x1d0] sm:$0xff] }
 0x52a   :  { %1754 = vmatpush.msra.mxu1 %v1682_v55 }
 0x52b   :  { %1411 = vmatpush.msrb.mxu3 %v1309_v14 }
 0x52c   :  { %1755 = vmatpush.msra.mxu1 %v1681_v27  ;;  %v1673_v27 = vld [vmem:[#allocation7 + $0x188] sm:$0xff] }
 0x52d   :  { %1412 = vmatpush.msrb.mxu3 %v1305_v49 }
 0x52e   :  { %1756 = vmatpush.msra.mxu1 %v1680_v11  ;;  %v1640_v11 = vld [vmem:[#allocation7 + $0x80] sm:$0xff] }
 0x52f   :  { %1413 = vmatpush.msrb.mxu3 %v1301_v53 }
 0x531   :  { %1414 = vmatpush.msrb.mxu3 %v1297_v57 }
 0x533   :  { %1415 = vmatpush.msrb.mxu3 %v1293_v48 }
 0x535   :  { %1416 = vmatpush.msrb.mxu3 %v1289_v56  ;;  %v1649_v56 = vld [vmem:[#allocation7 + $0xc8] sm:$0xff] }
 0x536   :  { %1417 = vmatmul.f32.vlgmr.msrb.gmra.mxu3 %v1286_v13 }
 0x537   :  { %1709 = vmatpush.msra.mxu3 %v1655_v22  ;;  %v1646_v22 = vld [vmem:[#allocation7 + $0xb0] sm:$0xff] }
 0x539   :  { %1710 = vmatpush.msra.mxu3 %v1654_v29 }
 0x53b   :  { %1711 = vmatpush.msra.mxu3 %v1653_v8  ;;  %v1644_v8 = vld [vmem:[#allocation7 + $0xa0] sm:$0xff] }
 0x53d   :  { %1712 = vmatpush.msra.mxu3 %v1652_v9 }
 0x53f   :  { %1713 = vmatpush.msra.mxu3 %v1651_v42  ;;  %v1670_v42 = vld [vmem:[#allocation7 + $0x170] sm:$0xff] }
 0x541   :  { %1714 = vmatpush.msra.mxu3 %v1650_v54 }
 0x543   :  { %1715 = vmatpush.msra.mxu3 %v1649_v56  ;;  %v1641_v56 = vld [vmem:[#allocation7 + $0x88] sm:$0xff] }
 0x545   :  { %1716 = vmatpush.msra.mxu3 %v1648_v61 }
 0x547   :  { %1717 = vmatpush.msra.mxu3 %v1647_v0 }
 0x549   :  { %1718 = vmatpush.msra.mxu3 %v1646_v22 }
 0x593   :  { %v1438_v58 = vpop.f32.mrf.mxu0 }
 0x594   :  { %v2767_v7 = vadd.f32 %v1438_v58, %v1356_v3  ;;  %v1679_v58 = vld [vmem:[#allocation7 + $0x1b8] sm:$0xff] }
 0x595   :  { %1757 = vmatpush.msra.mxu1 %v1679_v58 }
 0x596   :  { %v2771_v4 = vmul.f32 %v2765_v5, %v2767_v7 }
 0x597   :  { %1758 = vmatpush.msra.mxu1 %v1678_v1 }
 0x598   :  { %v1576_v44 = vmul.f32 %v2771_v4, %v2771_v4 }
 0x599   :  { %v1378_v38 = vpop.f32.mrf.mxu3 }
 0x59a   :  { %v2776_v18 = vmin.f32 %v1576_v44, 16.0  ;;  %v2778_v21 = vadd.f32 %v1378_v38, %v1353_v20 }
 0x59c   :  { %v1589_v25 = vmul.f32 3.8918573e-05, %v2776_v18  ;;  %v2783_v24 = vmul.f32 %v2765_v5, %v2778_v21  ;;  %v1578_v32 = vmul.f32 2.1237322e-06, %v2776_v18 }
 0x59e   :  { %v1590_v34 = vadd.f32 0.001143296, %v1589_v25  ;;  %v1456_v36 = vmul.f32 %v2783_v24, %v2783_v24  ;;  %v1579_v39 = vadd.f32 0.00028619796, %v1578_v32  ;;  %v1645_v32 = vld [vmem:[#allocation7 + $0xa8] sm:$0xff] }
 0x59f   :  { %1719 = vmatpush.msra.mxu3 %v1645_v32 }
 0x5a0   :  { %v1591_v60 = vmul.f32 %v1590_v34, %v2776_v18  ;;  %v2790_v13 = vmin.f32 %v1456_v36, 16.0  ;;  %v1580_v14 = vmul.f32 %v1579_v39, %v2776_v18  ;;  %v1677_v34 = vld [vmem:[#allocation7 + $0x1a8] sm:$0xff]  ;;  %v1671_v39 = vld [vmem:[#allocation7 + $0x178] sm:$0xff] }
 0x5a1   :  { %v1398_v40 = vpop.f32.mrf.mxu3  ;;  %1759 = vmatpush.msra.mxu1 %v1677_v34  ;;  %1720 = vmatpush.msra.mxu3 %v1644_v8 }
 0x5a2   :  { %v1592_v45 = vadd.f32 0.014752088, %v1591_v60  ;;  %v1458_v23 = vmul.f32 2.1237322e-06, %v2790_v13  ;;  %v2793_v28 = vadd.f32 %v1398_v40, %v1354_v19  ;;  %v1469_v12 = vmul.f32 3.8918573e-05, %v2790_v13  ;;  %1729 = vmatpush.msra.mxu0 %v1671_v39 }
 0x5a3   :  { %v1581_v41 = vadd.f32 0.0036580483, %v1580_v14  ;;  %v1676_v40 = vld [vmem:[#allocation7 + $0x1a0] sm:$0xff] }
 0x5a4   :  { %v1593_v26 = vmul.f32 %v1592_v45, %v2776_v18  ;;  %v1459_v50 = vadd.f32 0.00028619796, %v1458_v23  ;;  %v1470_v30 = vadd.f32 0.001143296, %v1469_v12  ;;  %v2799_v33 = vmul.f32 %v2765_v5, %v2793_v28  ;;  %1760 = vmatpush.msra.mxu1 %v1676_v40  ;;  %v1643_v45 = vld [vmem:[#allocation7 + $0x98] sm:$0xff]  ;;  %1730 = vmatpush.msra.mxu0 %v1670_v42 }
 0x5a5   :  { %v1582_v38 = vmul.f32 %v1581_v41, %v2776_v18  ;;  %v1675_v23 = vld [vmem:[#allocation7 + $0x198] sm:$0xff]  ;;  %1721 = vmatpush.msra.mxu3 %v1643_v45  ;;  %v1672_v41 = vld [vmem:[#allocation7 + $0x180] sm:$0xff] }
 0x5a6   :  { %v1594_v49 = vadd.f32 0.112945676, %v1593_v26  ;;  %v1460_v53 = vmul.f32 %v1459_v50, %v2790_v13  ;;  %v1471_v57 = vmul.f32 %v1470_v30, %v2790_v13  ;;  %v1496_v48 = vmul.f32 %v2799_v33, %v2799_v33  ;;  %1761 = vmatpush.msra.mxu1 %v1675_v23  ;;  %v1642_v50 = vld [vmem:[#allocation7 + $0x90] sm:$0xff]  ;;  %v1782_v45 = vld [vmem:[#allocation5 + $0x338] sm:$0xff] }
 0x5a7   :  { %v1583_v15 = vadd.f32 0.05243302, %v1582_v38  ;;  %v1674_v30 = vld [vmem:[#allocation7 + $0x190] sm:$0xff]  ;;  %1722 = vmatpush.msra.mxu3 %v1642_v50 }
 0x5a8   :  { %v1595_v59 = vmul.f32 %v1594_v49, %v2776_v18  ;;  %v1461_v31 = vadd.f32 0.0036580483, %v1460_v53  ;;  %v1472_v37 = vadd.f32 0.014752088, %v1471_v57  ;;  %v2807_v6 = vmin.f32 %v1496_v48, 16.0  ;;  %v1669_v53 = vld [vmem:[#allocation7 + $0x168] sm:$0xff]  ;;  %1762 = vmatpush.msra.mxu1 %v1674_v30 }
 0x5a9   :  { %v1584_v55 = vmul.f32 %v1583_v15, %v2776_v18  ;;  %v1355_v49 = vperm.slane %v2762_v62, 2  ;;  %1731 = vmatpush.msra.mxu0 %v1669_v53  ;;  %1723 = vmatpush.msra.mxu3 %v1641_v56  ;;  %v1662_v30 = vld [vmem:[#allocation7 + $0x130] sm:$0xff] }
 0x5aa   :  { %v1596_v63 = vadd.f32 0.4994258, %v1595_v59  ;;  %v1473_v51 = vmul.f32 %v1472_v37, %v2790_v13  ;;  %v1498_v3 = vmul.f32 2.1237322e-06, %v2807_v6  ;;  %v1509_v47 = vmul.f32 3.8918573e-05, %v2807_v6  ;;  %1763 = vmatpush.msra.mxu1 %v1673_v27 }
 0x5ab   :  { %v1462_v20 = vmul.f32 %v1461_v31, %v2790_v13  ;;  %v1668_v59 = vld [vmem:[#allocation7 + $0x160] sm:$0xff]  ;;  %1724 = vmatpush.msra.mxu3 %v1640_v11 }
 0x5ac   :  { %v1597_v10 = vmul.f32 %v1596_v63, %v2776_v18  ;;  %v1474_v16 = vadd.f32 0.112945676, %v1473_v51  ;;  %v1499_v44 = vadd.f32 0.00028619796, %v1498_v3  ;;  %v1510_v17 = vadd.f32 0.001143296, %v1509_v47  ;;  %1732 = vmatpush.msra.mxu0 %v1668_v59  ;;  %1764 = vmatpush.msra.mxu1 %v1672_v41 }
 0x5ad   :  { %v1463_v36 = vadd.f32 0.05243302, %v1462_v20  ;;  %v1585_v63 = vadd.f32 0.18741608, %v1584_v55  ;;  %v1667_v3 = vld [vmem:[#allocation7 + $0x158] sm:$0xff]  ;;  %v1666_v20 = vld [vmem:[#allocation7 + $0x150] sm:$0xff] }
 0x5ae   :  { %v2815_v2 = vadd.f32 1.0, %v1597_v10  ;;  %v1475_v25 = vmul.f32 %v1474_v16, %v2790_v13  ;;  %v1500_v29 = vmul.f32 %v1499_v44, %v2807_v6  ;;  %v1511_v46 = vmul.f32 %v1510_v17, %v2807_v6  ;;  %1733 = vmatpush.msra.mxu0 %v1667_v3  ;;  %v1659_v3 = vld [vmem:[#allocation7 + $0x118] sm:$0xff] }
 0x5af   :  { %v1464_v52 = vmul.f32 %v1463_v36, %v2790_v13  ;;  %v1586_v38 = vmul.f32 %v1585_v63, %v2776_v18  ;;  %v1664_v36 = vld [vmem:[#allocation7 + $0x140] sm:$0xff] }
 0x5b0   :  { %1999 = vrcp.f32 %v2815_v2  ;;  %v1476_v19 = vadd.f32 0.4994258, %v1475_v25  ;;  %v1512_v60 = vadd.f32 0.014752088, %v1511_v46  ;;  %v1501_v43 = vadd.f32 0.0036580483, %v1500_v29  ;;  %1734 = vmatpush.msra.mxu0 %v1666_v20 }
 0x5b1   :  { %v1465_v37 = vadd.f32 0.18741608, %v1464_v52  ;;  %vm1604_vm0 = vweird.f32 %v2815_v2  ;;  %v1665_v25 = vld [vmem:[#allocation7 + $0x148] sm:$0xff]  ;;  %v1610_v29 = vand.u32 2147483648, %v2815_v2  ;;  %v1587_v39 = vadd.f32 1.1283791, %v1586_v38 }
 0x5b2   :  { %v1477_v9 = vmul.f32 %v1476_v19, %v2790_v13  ;;  %v1513_v12 = vmul.f32 %v1512_v60, %v2807_v6  ;;  %v1502_v48 = vmul.f32 %v1501_v43, %v2807_v6  ;;  %1735 = vmatpush.msra.mxu0 %v1665_v25  ;;  %v1663_v43 = vld [vmem:[#allocation7 + $0x138] sm:$0xff]  ;;  %v1657_v25 = vld [vmem:[#allocation7 + $0x108] sm:$0xff] }
 0x5b3   :  { %v1466_v44 = vmul.f32 %v1465_v37, %v2790_v13  ;;  %v1611_v55 = vor.u32 1.1754944e-38, %v1610_v29  ;;  %v1588_v59 = vmul.f32 %v1587_v39, %v2771_v4  ;;  %v1660_v37 = vld [vmem:[#allocation7 + $0x120] sm:$0xff]  ;;  %v1444_v39 = vmul.f32 0.5, %v2767_v7  ;;  %v1779_v7 = vld [vmem:[#allocation5 + $0x278] sm:$0xff] }
 0x5b4   :  { %v2824_v26 = vadd.f32 1.0, %v1477_v9  ;;  %v1514_v14 = vadd.f32 0.112945676, %v1513_v12  ;;  %v1503_v47 = vadd.f32 0.05243302, %v1502_v48  ;;  %1736 = vmatpush.msra.mxu0 %v1664_v36  ;;  %v1784_v36 = vld [vmem:[#allocation5 + $0x3b8] sm:$0xff] }
 0x5b5   :  { %v1467_v19 = vadd.f32 1.1283791, %v1466_v44  ;;  %v1658_v44 = vld [vmem:[#allocation7 + $0x110] sm:$0xff] }
 0x5b6   :  { %v2826_v54 = vpop.eup %1999  ;;  %2001 = vrcp.f32 %v2824_v26  ;;  %v1515_v61 = vmul.f32 %v1514_v14, %v2807_v6  ;;  %v1504_v46 = vmul.f32 %v1503_v47, %v2807_v6  ;;  %v1488_v8 = vand.u32 2147483647, %v2824_v26  ;;  %1737 = vmatpush.msra.mxu0 %v1663_v43 }
 0x5b7   :  { %v1600_v57 = vmul.f32 %v2826_v54, %v2815_v2  ;;  %vm1605_vm1 = vweird.f32 %v2826_v54  ;;  %v1490_v15 = vand.u32 2147483648, %v2824_v26  ;;  %vm1484_vm4 = vweird.f32 %v2824_v26 }
 0x5b8   :  { %v1516_v0 = vadd.f32 0.4994258, %v1515_v61  ;;  %vm2867_vm3 = vmor %vm1604_vm0, %vm1605_vm1  ;;  %v1505_v23 = vadd.f32 0.18741608, %v1504_v46  ;;  %vm1489_vm8 = vcmp.eq.f32.partialorder %v1488_v8, 8.507059e+37  ;;  %1738 = vmatpush.msra.mxu0 %v1662_v30  ;;  %v1441_v47 = vmul.f32 0.5, %v2778_v21 }
 0x5b9   :  { %v1601_v31 = vsub.f32 1.0, %v1600_v57  ;;  %v1418_v62 = vpop.f32.mrf.mxu3  ;;  %v1491_v14 = vor.u32 1.1754944e-38, %v1490_v15  ;;  %v1656_v46 = vld [vmem:[#allocation7 + $0x100] sm:$0xff]  ;;  %v1781_v30 = vld [vmem:[#allocation5 + $0x2f8] sm:$0xff] }
 0x5ba   :  { %v2835_v51 = vadd.f32 %v1418_v62, %v1355_v49  ;;  %v1517_v17 = vmul.f32 %v1516_v0, %v2807_v6  ;;  %v1506_v27 = vmul.f32 %v1505_v23, %v2807_v6 }
 0x5bb   :  { %v1602_v58 = vmul.f32 %v2826_v54, %v1601_v31 }
 0x5bc   :  { %v2840_v10 = vmul.f32 %v2765_v5, %v2835_v51  ;;  %v2002_v16 = vpop.eup %2001  ;;  %v1608_v5 = vand.u32 2147483647, %v2815_v2  ;;  %v2852_v13 = vadd.f32 1.0, %v1517_v17  ;;  %v1468_v2 = vmul.f32 %v1467_v19, %v2783_v24 }
 0x5bd   :  { %v1480_v22 = vmul.f32 %v2002_v16, %v2824_v26  ;;  %v1603_v32 = vadd.f32 %v2826_v54, %v1602_v58  ;;  %vm1485_vm2 = vweird.f32 %v2002_v16  ;;  %v1507_v0 = vadd.f32 1.1283791, %v1506_v27 }
 0x5be   :  { %v1536_v1 = vmul.f32 %v2840_v10, %v2840_v10  ;;  %2003 = vrcp.f32 %v2852_v13  ;;  %vm1609_vm5 = vcmp.eq.f32.partialorder %v1608_v5, 8.507059e+37  ;;  %vm1486_vm7 = vmor %vm1484_vm4, %vm1485_vm2  ;;  %v1530_v58 = vand.u32 2147483648, %v2852_v13 }
 0x5bf   :  { %v1481_v18 = vsub.f32 1.0, %v1480_v22  ;;  %v1607_v12 = vsel %vm2867_vm3, %v2826_v54, %v1603_v32  ;;  %v1661_v54 = vld [vmem:[#allocation7 + $0x128] sm:$0xff]  ;;  %v1528_v20 = vand.u32 2147483647, %v2852_v13  ;;  %vm1524_vm9 = vweird.f32 %v2852_v13 }
 0x5c0   :  { %v2856_v34 = vmin.f32 %v1536_v1, 16.0  ;;  %v1612_v48 = vsel %vm1609_vm5, %v1611_v55, %v1607_v12  ;;  %1739 = vmatpush.msra.mxu0 %v1661_v54  ;;  %v1531_v5 = vor.u32 1.1754944e-38, %v1530_v58  ;;  %v1508_v32 = vmul.f32 %v1507_v0, %v2799_v33  ;;  %v1777_v54 = vld [vmem:[#allocation5 + $0x1f8] sm:$0xff] }
 0x5c1   :  { %v1482_v60 = vmul.f32 %v2002_v16, %v1481_v18  ;;  %v1613_v62 = vmul.f32 %v1612_v48, %v1588_v59  ;;  %vm1529_vm11 = vcmp.eq.f32.partialorder %v1528_v20, 8.507059e+37  ;;  %v1776_v48 = vld [vmem:[#allocation5 + $0x1b8] sm:$0xff] }
 0x5c2   :  { %v1538_v40 = vmul.f32 2.1237322e-06, %v2856_v34  ;;  %v1549_v9 = vmul.f32 3.8918573e-05, %v2856_v34  ;;  %1740 = vmatpush.msra.mxu0 %v1660_v37  ;;  %v1771_v20 = vld [vmem:[#allocation5 + $0x78] sm:$0xff] }
 0x5c3   :  { %v1483_v42 = vadd.f32 %v2002_v16, %v1482_v60  ;;  %v1900_v38 = vclamps-f32 %v1613_v62, 1.0 }
 0x5c4   :  { %v1539_v52 = vadd.f32 0.00028619796, %v1538_v40  ;;  %v1550_v50 = vadd.f32 0.001143296, %v1549_v9  ;;  %v2004_v57 = vpop.eup %2003  ;;  %1741 = vmatpush.msra.mxu0 %v1659_v3  ;;  %v1783_v9 = vld [vmem:[#allocation5 + $0x378] sm:$0xff] }
 0x5c5   :  { %v1487_v49 = vsel %vm1486_vm7, %v2002_v16, %v1483_v42  ;;  %v1520_v24 = vmul.f32 %v2004_v57, %v2852_v13  ;;  %vm1525_vm6 = vweird.f32 %v2004_v57  ;;  %v1785_v13 = vld [vmem:[#allocation5 + $0x3f8] sm:$0xff]  ;;  %v1619_v15 = vadd.f32 1.0, %v1900_v38  ;;  %v1820_v38 = vld [vmem:[#allocation8 + $0x60] sm:$0xff] }
 0x5c6   :  { %v1540_v26 = vmul.f32 %v1539_v52, %v2856_v34  ;;  %v1551_v53 = vmul.f32 %v1550_v50, %v2856_v34  ;;  %v1492_v56 = vsel %vm1489_vm8, %v1491_v14, %v1487_v49  ;;  %1742 = vmatpush.msra.mxu0 %v1658_v44  ;;  %vm1526_vm10 = vmor %vm1524_vm9, %vm1525_vm6  ;;  %1787 = vmatpush.msrb.mxu2 %v1785_v13  ;;  %v1442_v42 = vmul.f32 0.5, %v2793_v28  ;;  %v1778_v49 = vld [vmem:[#allocation5 + $0x238] sm:$0xff]  ;;  %v1822_v44 = vld [vmem:[#allocation8 + $0x70] sm:$0xff] }
 0x5c7   :  { %v1493_v31 = vmul.f32 %v1492_v56, %v1468_v2  ;;  %v1521_v11 = vsub.f32 1.0, %v1520_v24  ;;  %v1623_v12 = vmul.f32 %v1619_v15, %v1444_v39  ;;  %v1780_v2 = vld [vmem:[#allocation5 + $0x2b8] sm:$0xff]  ;;  %v1812_v13 = vld [vmem:[#allocation8 + $0x20] sm:$0xff] }
 0x5c8   :  { %v1552_v61 = vadd.f32 0.014752088, %v1551_v53  ;;  %v1541_v41 = vadd.f32 0.0036580483, %v1540_v26  ;;  %1743 = vmatpush.msra.mxu0 %v1657_v25  ;;  %1788 = vmatpush.msrb.mxu2 %v1784_v36  ;;  %v1775_v24 = vld [vmem:[#allocation5 + $0x178] sm:$0xff] }
 0x5c9   :  { %v1897_v63 = vclamps-f32 %v1493_v31, 1.0  ;;  %v1522_v4 = vmul.f32 %v2004_v57, %v1521_v11  ;;  %v1815_v25 = vld [vmem:[#allocation8 + $0x38] sm:$0xff] }
 0x5ca   :  { %v1553_v6 = vmul.f32 %v1552_v61, %v2856_v34  ;;  %v1542_v1 = vmul.f32 %v1541_v41, %v2856_v34  ;;  %1744 = vmatpush.msra.mxu0 %v1656_v46  ;;  %1789 = vmatpush.msrb.mxu2 %v1783_v9  ;;  %v1774_v61 = vld [vmem:[#allocation5 + $0x138] sm:$0xff]  ;;  %v2008_v46 = vld [vmem:[#allocation2] sm:$0xff] }
 0x5cb   :  { %v1616_v16 = vadd.f32 1.0, %v1897_v63  ;;  %v1523_v22 = vadd.f32 %v2004_v57, %v1522_v4  ;;  %v1772_v4 = vld [vmem:[#allocation5 + $0xb8] sm:$0xff] }
 0x5cc   :  { %v1554_v17 = vadd.f32 0.112945676, %v1553_v6  ;;  %v1543_v40 = vadd.f32 0.05243302, %v1542_v1  ;;  %1790 = vmatpush.msrb.mxu2 %v1782_v45  ;;  %v1773_v6 = vld [vmem:[#allocation5 + $0xf8] sm:$0xff]  ;;  %v1817_v1 = vld [vmem:[#allocation8 + $0x48] sm:$0xff] }
 0x5cd   :  { %v1620_v21 = vmul.f32 %v1616_v16, %v1441_v47  ;;  %v1527_v18 = vsel %vm1526_vm10, %v2004_v57, %v1523_v22  ;;  %v1443_v47 = vmul.f32 0.5, %v2835_v51  ;;  %v1770_v16 = vld [vmem:[#allocation5 + $0x38] sm:$0xff]  ;;  %v1818_v51 = vld [vmem:[#allocation8 + $0x50] sm:$0xff]  ;;  %v1809_v45 = vld [vmem:[#allocation8 + $0x8] sm:$0xff] }
 0x5ce   :  { %v1555_v29 = vmul.f32 %v1554_v17, %v2856_v34  ;;  %v1532_v19 = vsel %vm1529_vm11, %v1531_v5, %v1527_v18  ;;  %v1544_v50 = vmul.f32 %v1543_v40, %v2856_v34  ;;  %1791 = vmatpush.msrb.mxu2 %v1781_v30  ;;  %v1821_v17 = vld [vmem:[#allocation8 + $0x68] sm:$0xff]  ;;  %v1819_v22 = vld [vmem:[#allocation8 + $0x58] sm:$0xff]  ;;  %v1814_v5 = vld [vmem:[#allocation8 + $0x30] sm:$0xff] }
 0x5cf   :  { %1705 = vmatmul.f32.vlgmr.msrb.gmra.mxu1 %v1620_v21  ;;  %v1533_v60 = vmul.f32 %v1532_v19, %v1508_v32  ;;  %v1816_v21 = vld [vmem:[#allocation8 + $0x40] sm:$0xff]  ;;  %v1688_v32 = vperm.slane %v2008_v46, 6  ;;  %v1813_v18 = vld [vmem:[#allocation8 + $0x28] sm:$0xff]  ;;  %v1912_v30 = vld [vmem:[#allocation2 + $0x8] ss:$0 sm:$0xff] }
 0x5d0   :  { %v1556_v8 = vadd.f32 0.4994258, %v1555_v29  ;;  %v1545_v14 = vadd.f32 0.18741608, %v1544_v50  ;;  %1792 = vmatpush.msrb.mxu2 %v1780_v2 }
 0x5d1   :  { %v1898_v33 = vclamps-f32 %v1533_v60, 1.0 }
 0x5d2   :  { %v1557_v43 = vmul.f32 %v1556_v8, %v2856_v34  ;;  %1793 = vmatpush.msrb.mxu2 %v1779_v7  ;;  %v1546_v53 = vmul.f32 %v1545_v14, %v2856_v34  ;;  %v1811_v8 = vld [vmem:[#allocation8 + $0x18] sm:$0xff] }
 0x5d3   :  { %v1617_v52 = vadd.f32 1.0, %v1898_v33  ;;  %v1810_v33 = vld [vmem:[#allocation8 + $0x10] sm:$0xff] }
 0x5d4   :  { %v1558_v23 = vadd.f32 1.0, %v1557_v43  ;;  %1794 = vmatpush.msrb.mxu2 %v1778_v49  ;;  %v1547_v27 = vadd.f32 1.1283791, %v1546_v53 }
 0x5d5   :  { %v1621_v55 = vmul.f32 %v1617_v52, %v1442_v42 }
 0x5d6   :  { %2005 = vrcp.f32 %v1558_v23  ;;  %v1570_v56 = vand.u32 2147483648, %v1558_v23  ;;  %1795 = vmatpush.msrb.mxu2 %v1777_v54  ;;  %v1568_v31 = vand.u32 2147483647, %v1558_v23  ;;  %vm1564_vm13 = vweird.f32 %v1558_v23 }
 0x5d7   :  { %1765 = vmatmul.f32.vlgmr.msra.gmra.mxu1 %v1623_v12  ;;  %1725 = vmatmul.f32.vlgmr.msra.gmra.mxu3 %v1621_v55  ;;  %v1548_v34 = vmul.f32 %v1547_v27, %v2840_v10  ;;  %v1823_v10 = vld [vmem:[#allocation8 + $0x78] sm:$0xff]  ;;  %v1786_v12 = vperm.slane %v2008_v46, 7 }
 0x5d8   :  { %1796 = vmatpush.msrb.mxu2 %v1776_v48  ;;  %v1571_v62 = vor.u32 1.1754944e-38, %v1570_v56  ;;  %vm1569_vm15 = vcmp.eq.f32.partialorder %v1568_v31, 8.507059e+37  ;;  %1825 = vmatpush.msrb.mxu3 %v1823_v10 }
 0x5da   :  { %1797 = vmatpush.msrb.mxu2 %v1775_v24  ;;  %1826 = vmatpush.msrb.mxu3 %v1822_v44 }
 0x5dc   :  { %v2006_v26 = vpop.eup %2005  ;;  %1798 = vmatpush.msrb.mxu2 %v1774_v61  ;;  %1827 = vmatpush.msrb.mxu3 %v1821_v17 }
 0x5dd   :  { %v1560_v28 = vmul.f32 %v2006_v26, %v1558_v23  ;;  %vm1565_vm12 = vweird.f32 %v2006_v26  ;;  %v1808_v23 = vld [vmem:[#allocation8] sm:$0xff] }
 0x5de   :  { %vm1566_vm14 = vmor %vm1564_vm13, %vm1565_vm12  ;;  %1799 = vmatpush.msrb.mxu2 %v1773_v6  ;;  %1828 = vmatpush.msrb.mxu3 %v1820_v38 }
 0x5df   :  { %v1561_v57 = vsub.f32 1.0, %v1560_v28 }
 0x5e0   :  { %1800 = vmatpush.msrb.mxu2 %v1772_v4  ;;  %1829 = vmatpush.msrb.mxu3 %v1819_v22 }
 0x5e1   :  { %v1562_v59 = vmul.f32 %v2006_v26, %v1561_v57 }
 0x5e2   :  { %1801 = vmatpush.msrb.mxu2 %v1771_v20  ;;  %1830 = vmatpush.msrb.mxu3 %v1818_v51 }
 0x5e3   :  { %v1563_v37 = vadd.f32 %v2006_v26, %v1562_v59 }
 0x5e4   :  { %1802 = vmatpush.msrb.mxu2 %v1770_v16  ;;  %1831 = vmatpush.msrb.mxu3 %v1817_v1 }
 0x5e5   :  { %v1567_v11 = vsel %vm1566_vm14, %v2006_v26, %v1563_v37 }
 0x5e6   :  { %v1572_v41 = vsel %vm1569_vm15, %v1571_v62, %v1567_v11  ;;  %1832 = vmatpush.msrb.mxu3 %v1816_v21 }
 0x5e7   :  { %v1573_v63 = vmul.f32 %v1572_v41, %v1548_v34 }
 0x5e8   :  { %1833 = vmatpush.msrb.mxu3 %v1815_v25 }
 0x5e9   :  { %v1899_v3 = vclamps-f32 %v1573_v63, 1.0 }
 0x5ea   :  { %1834 = vmatpush.msrb.mxu3 %v1814_v5 }
 0x5eb   :  { %v1618_v0 = vadd.f32 1.0, %v1899_v3 }
 0x5ec   :  { %1835 = vmatpush.msrb.mxu3 %v1813_v18 }
 0x5ed   :  { %v1622_v58 = vmul.f32 %v1618_v0, %v1443_v47 }
 0x5ee   :  { %1836 = vmatpush.msrb.mxu3 %v1812_v13 }
 0x5ef   :  { %1745 = vmatmul.f32.vlgmr.msra.gmra.mxu0 %v1622_v58 }
 0x5f0   :  { %1837 = vmatpush.msrb.mxu3 %v1811_v8 }
 0x5f2   :  { %1838 = vmatpush.msrb.mxu3 %v1810_v33 }
 0x5f4   :  { %1839 = vmatpush.msrb.mxu3 %v1809_v45 }
 0x5f6   :  { %1840 = vmatpush.msrb.mxu3 %v1808_v23 }
 0x64c   :  { %v1706_v29 = vpop.f32.mrf.mxu1 }
 0x64d   :  { %v1707_v19 = vadd.f32 %v1706_v29, %v1688_v32 }
 0x654   :  { %v1766_v9 = vpop.f32.mrf.mxu1 }
 0x65a   :  { %v1726_v36 = vpop.f32.mrf.mxu3 }
 0x65b   :  { %v1727_v15 = vadd.f32 %v1726_v36, %v1707_v19 }
 0x66c   :  { %v1746_v60 = vpop.f32.mrf.mxu0 }
 0x66d   :  { %v1747_v40 = vadd.f32 %v1746_v60, %v1727_v15 }
 0x66f   :  { %v1767_v43 = vadd.f32 %v1766_v9, %v1747_v40 }
 0x671   :  { %v1769_v39 = vadd.f32 %v1767_v43, %v2746_v35 }
 0x673   :  { %1803 = vmatmul.f32.vlgmr.msrb.gmra.mxu2 %v1769_v39 }
 0x6f6   :  { %v1804_v42 = vpop.f32.mrf.mxu2 }
 0x6f7   :  { %v1805_v52 = vadd.f32 %v1804_v42, %v1786_v12 }
 0x6f9   :  { %v1807_v50 = vmax.f32 %v1805_v52, 0.0 }
 0x6fb   :  { %1841 = vmatmul.f32.vlgmr.msrb.gmra.mxu3 %v1807_v50 }
 0x77e   :  { %v1842_v35 = vpop.f32.mrf.mxu3 }
 0x77f   :  { %v1843_v55 = vadd.f32 %v1912_v30, %v1842_v35 }
 0x781   :  { %1845 = vst [vmem:[#allocation10] sm:$0xff] %v1843_v55 }
 0x782   :  { %1856 = dma.vmem_to_hbm [thread:$0]  %s1852_s30, 128, %s1854_s10, [#allocation4]  }
 0x783   :  { %2135 = dma.done.wait [#allocation4], 128  }
 0x784   :  { %2136 = vsyncadd [#allocation4], 4294967168 }
 0x785   :  { %1861 = vsyncpa [#allocation3], 1 }
 0x786   :  { %1862 = vsyncpa [#allocation6], 1 }
 0x787   :  { %1863 = vsyncpa [#allocation9], 1 }
 0x788   :  { %1864 = vsyncpa [#allocation4], 1 }

</bundles_post_ra>
